<compile_context>
chip_gen: v5e
topology: v5e:2x2
jax: 0.10.0
libtpu: 0.0.40
codegen_flags: <defaults>
</compile_context>

<pallas_src>
import jax
import jax.numpy as jnp
from jax import lax
from jax.experimental import pallas as pl
from jax.experimental.pallas import tpu as pltpu


def _elu(x):
    return jnp.where(x > 0, x, jnp.exp(jnp.minimum(x, 0.0)) - 1.0)


def emgnet_kernel(x_ref, wbig_ref, b12_ref, p4_ref, w3d_ref, w3p_ref, b3_ref,
                  wfc_ref, agg_ref, bfc_ref, out_ref):
    x = x_ref[0]                                  # (G*C, T_pad) -- packed batch
    gc = x.shape[0]
    gn, cols = wbig_ref.shape
    tp = cols // gc                               # temporal kernel length
    t_used = p4_ref.shape[0]                      # 256 (lane-aligned, exact trim)
    n_taps = w3d_ref.shape[1]                     # N_s depthwise taps
    n_cls, _, w2 = wfc_ref.shape                  # classes, (G*N_s), pooled width

    # ---- block1 + BN1 + block2 + BN2 fused: im2col + single MXU matmul ----
    x_unf = jnp.concatenate([x[:, k:k + t_used] for k in range(tp)], axis=0)   # (tp*G*C, 256)
    x2 = jnp.dot(wbig_ref[...], x_unf, preferred_element_type=jnp.float32)     # (G*N_s, 256)
    x2 = _elu(x2 + b12_ref[...])

    # ---- avgpool(1,4) as matmul; pool matrix pre-padded for block-3 padding ----
    xp = jnp.dot(x2, p4_ref[...], preferred_element_type=jnp.float32)          # (G*N_s, pad_l+W2+pad_r)

    # ---- block 3: depthwise temporal conv (taps along lanes) ----
    w3d = w3d_ref[...]                            # (G*N_s, N_s)
    x3 = jnp.zeros((gn, w2), jnp.float32)
    for k in range(n_taps):
        x3 = x3 + w3d[:, k:k + 1] * xp[:, k:k + w2]

    # pointwise 1x1 conv (BN3 scale folded into the weight) + BN3 shift + ELU
    x3 = jnp.dot(w3p_ref[...], x3, preferred_element_type=jnp.float32) + b3_ref[...]
    x3 = _elu(x3)                                 # (G*N_s, W2)

    # ---- fc with avgpool(1,8) + channel-major flatten folded into weights ----
    cols_out = []
    for k in range(n_cls):
        prod = x3 * wfc_ref[k]                                   # (G*N_s, W2)
        cols_out.append(jnp.sum(prod, axis=-1, keepdims=True))   # (G*N_s, 1)
    per_row = jnp.concatenate(cols_out, axis=1)                  # (G*N_s, K)
    logits = jnp.dot(agg_ref[...], per_row,
                     preferred_element_type=jnp.float32) + bfc_ref[...]        # (G, K)

    m = jnp.max(logits, axis=-1, keepdims=True)
    e = jnp.exp(logits - m)
    out_ref[0] = e / jnp.sum(e, axis=-1, keepdims=True)


def _fold_bn(gamma, beta, mean, var, eps=1e-5):
    s = gamma / jnp.sqrt(var + eps)
    return s, beta - mean * s


def emgnet_forward(x, params, *, time_point, N_t, N_s, num_classes, group_size=None):
    B, C, T = x.shape
    tp = time_point
    K = num_classes
    assert N_s % N_t == 0
    r = N_s // N_t

    if group_size is None:
        group_size = next(g for g in (8, 4, 2, 1) if B % g == 0)
    G = group_size
    assert B % G == 0
    GN, GC = G * N_s, G * C

    s1, b1 = _fold_bn(*params['bn1'])             # (N_t,)
    s2, b2 = _fold_bn(*params['bn2'])             # (N_s,)
    s3, b3 = _fold_bn(*params['bn3'])             # (N_s,)

    T_pad = T + tp                                # ZeroPad2d((tp//2, tp//2+1))
    T1 = T + 1
    W2 = T1 // 4
    T_used = 4 * W2                               # lane-aligned trim (exact)
    W4 = W2 // 8
    assert N_s * W4 == params['fc_w'].shape[1], "fc1 in_features implies T == 256"

    pad_l = N_s // 2 - 1
    pad_r = N_s // 2

    f32 = jnp.float32
    w1m = params['w1'].reshape(N_t, tp).astype(f32)
    w2m = params['w2'].reshape(N_s, C).astype(f32)
    w3dm = params['w3d'].reshape(N_s, N_s).astype(f32)
    w3pm = params['w3p'].reshape(N_s, N_s).astype(f32)
    fcw = params['fc_w'].astype(f32)              # (K, N_s*W4)
    fcb = params['fc_b'].astype(f32)

    gt = jnp.arange(N_s) // r
    eyeG = jnp.eye(G, dtype=f32)

    # Fused block1+BN1+block2+BN2 weight: W_core[j, k, c]
    W_core = (s2[:, None, None] * s1[gt][:, None, None]
              * w1m[gt][:, :, None] * w2m[:, None, :])            # (N_s, tp, C)
    # Block-diagonal over the packed batch; cols ordered (k, g, c) to match im2col.
    W_big = jnp.einsum('gh,jkc->gjkhc', eyeG, W_core).reshape(GN, tp * GC)
    bias12 = s2 * b1[gt] * jnp.sum(w2m, axis=1) + b2              # (N_s,)
    bias12_t = jnp.tile(bias12, G).reshape(GN, 1)

    # avgpool(1,4) matmul, pre-padded with zero cols (= block-3 ZeroPad2d)
    Wp = pad_l + W2 + pad_r
    i4 = jnp.arange(T_used)[:, None]
    j4 = jnp.arange(Wp)[None, :]
    p4p = jnp.where((j4 >= pad_l) & (j4 < pad_l + W2) & (i4 // 4 == (j4 - pad_l)),
                    0.25, 0.0).astype(f32)                        # (T_used, Wp)

    w3d_t = jnp.tile(w3dm, (G, 1))                                # (GN, N_s)
    w3p_eff = s3[:, None] * w3pm                                  # BN3 scale folded
    w3p_blk = jnp.einsum('gh,oi->gohi', eyeG, w3p_eff).reshape(GN, GN)
    b3_t = jnp.tile(b3, G).reshape(GN, 1)

    # Fold avgpool(1,8) + channel-major flatten into the fc weight.
    i8 = jnp.arange(W2)[:, None]
    j8 = jnp.arange(W4)[None, :]
    p8 = jnp.where((i8 // 8 == j8) & (i8 < 8 * W4), 1.0 / 8.0, 0.0).astype(f32)  # (W2, W4)
    fcw3 = fcw.reshape(K, N_s, W4)
    wfc_eff = jnp.einsum('tw,kjw->kjt', p8, fcw3)                 # (K, N_s, W2)
    wfc_t = jnp.tile(wfc_eff, (1, G, 1))                          # (K, GN, W2)

    agg = jnp.kron(eyeG, jnp.ones((1, N_s), f32))                 # (G, GN)
    fcb2 = fcb.reshape(1, K)

    # Input: zero-pad time, pack G batch elements along the sublane axis.
    x_pad = jnp.pad(x.astype(f32), ((0, 0), (0, 0), (tp // 2, tp // 2 + 1)))
    x_packed = x_pad.reshape(B // G, GC, T_pad)

    args = (x_packed, W_big, bias12_t, p4p, w3d_t, w3p_blk, b3_t, wfc_t, agg, fcb2)

    def full_spec(a):
        nd = a.ndim
        return pl.BlockSpec(a.shape, lambda b, _nd=nd: (0,) * _nd)

    in_specs = [pl.BlockSpec((1, GC, T_pad), lambda b: (b, 0, 0))]
    in_specs += [full_spec(a) for a in args[1:]]

    out = pl.pallas_call(
        emgnet_kernel,
        out_shape=jax.ShapeDtypeStruct((B // G, G, K), jnp.float32),
        grid_spec=pltpu.PrefetchScalarGridSpec(
            num_scalar_prefetch=0,
            grid=(B // G,),
            in_specs=in_specs,
            out_specs=pl.BlockSpec((1, G, K), lambda b: (b, 0, 0)),
        ),
        compiler_params=pltpu.CompilerParams(dimension_semantics=("parallel",)),
    )(*args)
    return out.reshape(B, K)


# ----------------------- pure-JAX reference (for checking) -----------------------
def reference_forward(x, params, *, time_point, N_t, N_s, num_classes):
    eps = 1e-5
    tp = time_point
    hp = lax.Precision.HIGHEST
    B, C, T = x.shape

    def bn(y, p):
        g, be, mu, var = (a.reshape(1, -1, 1, 1) for a in p)
        return (y - mu) / jnp.sqrt(var + eps) * g + be

    y = x.reshape(B, 1, C, T)
    y = jnp.pad(y, ((0, 0), (0, 0), (0, 0), (tp // 2, tp // 2 + 1)))
    y = lax.conv_general_dilated(y, params['w1'], (1, 1), 'VALID',
                                 dimension_numbers=('NCHW', 'OIHW', 'NCHW'), precision=hp)
    y = bn(y, params['bn1'])

    y = lax.conv_general_dilated(y, params['w2'], (1, 1), 'VALID',
                                 dimension_numbers=('NCHW', 'OIHW', 'NCHW'),
                                 feature_group_count=N_t, precision=hp)
    y = bn(y, params['bn2'])
    y = jnp.where(y > 0, y, jnp.exp(jnp.minimum(y, 0.0)) - 1.0)
    W = y.shape[-1]
    y = y[..., :W - W % 4].reshape(y.shape[:-1] + (W // 4, 4)).mean(-1)

    y = jnp.pad(y, ((0, 0), (0, 0), (0, 0), (N_s // 2 - 1, N_s // 2)))
    y = lax.conv_general_dilated(y, params['w3d'], (1, 1), 'VALID',
                                 dimension_numbers=('NCHW', 'OIHW', 'NCHW'),
                                 feature_group_count=N_s, precision=hp)
    y = lax.conv_general_dilated(y, params['w3p'], (1, 1), 'VALID',
                                 dimension_numbers=('NCHW', 'OIHW', 'NCHW'), precision=hp)
    y = bn(y, params['bn3'])
    y = jnp.where(y > 0, y, jnp.exp(jnp.minimum(y, 0.0)) - 1.0)
    W = y.shape[-1]
    y = y[..., :W - W % 8].reshape(y.shape[:-1] + (W // 8, 8)).mean(-1)

    flat = y.reshape(B, -1)
    logits = jnp.dot(flat, params['fc_w'].T, precision=hp) + params['fc_b']
    return jax.nn.softmax(logits, axis=-1)


def init_params(key, *, num_classes, time_point, channel, N_t, N_s):
    ks = jax.random.split(key, 12)

    def nrm(k, shape, scale=0.1):
        return (scale * jax.random.normal(k, shape)).astype(jnp.float32)

    def bn(k, n):
        k1, k2, k3, k4 = jax.random.split(k, 4)
        gamma = 1.0 + 0.1 * jax.random.normal(k1, (n,))
        beta = 0.1 * jax.random.normal(k2, (n,))
        mean = 0.1 * jax.random.normal(k3, (n,))
        var = 0.5 + 0.2 * jnp.abs(jax.random.normal(k4, (n,)))
        return (gamma.astype(jnp.float32), beta.astype(jnp.float32),
                mean.astype(jnp.float32), var.astype(jnp.float32))

    return dict(
        w1=nrm(ks[0], (N_t, 1, 1, time_point)),
        w2=nrm(ks[1], (N_s, 1, channel, 1)),
        w3d=nrm(ks[2], (N_s, 1, 1, N_s)),
        w3p=nrm(ks[3], (N_s, N_s, 1, 1)),
        fc_w=nrm(ks[4], (num_classes, N_s * 2 * (256 // 64))),
        fc_b=nrm(ks[5], (num_classes,)),
        bn1=bn(ks[6], N_t),
        bn2=bn(ks[7], N_s),
        bn3=bn(ks[8], N_s),
    )


if __name__ == "__main__":
    # Config consistent with EMGNet.__init__ constraints:
    #   time_point odd, N_s // 2 != 1, N_s % N_t == 0 (grouped conv),
    #   T = 256 implied by fc1 in_features = N_s * 2 * (256 // 64).
    num_classes = 4
    time_point = 7
    channel = 4
    N_t, N_s = 8, 16
    B, T = 2, 256
    # TODO(synk): Dropout has no inference-time effect (identity in eval mode).

    key = jax.random.PRNGKey(0)
    kx, kp = jax.random.split(key)
    x = jax.random.normal(kx, (B, channel, T), jnp.float32)
    params = init_params(kp, num_classes=num_classes, time_point=time_point,
                         channel=channel, N_t=N_t, N_s=N_s)

    out = emgnet_forward(x, params, time_point=time_point, N_t=N_t, N_s=N_s,
                         num_classes=num_classes)
    out = jax.block_until_ready(out)

    ref = reference_forward(x, params, time_point=time_point, N_t=N_t, N_s=N_s,
                            num_classes=num_classes)
    assert out.shape == (B, num_classes)
    assert jnp.allclose(jnp.sum(out, axis=-1), 1.0, atol=1e-5)
    assert jnp.allclose(out, ref, atol=2e-3, rtol=2e-3), (out, ref)
    print("KERNEL_OK")
</pallas_src>

<mosaic_0001>
module attributes {stable_mosaic.version = 11 : i64} {
  func.func @emgnet_kernel(%arg0: i32, %arg1: memref<1x8x263xf32, #tpu.memory_space<vmem>>, %arg2: memref<32x56xf32, #tpu.memory_space<vmem>>, %arg3: memref<32x1xf32, #tpu.memory_space<vmem>>, %arg4: memref<256x79xf32, #tpu.memory_space<vmem>>, %arg5: memref<32x16xf32, #tpu.memory_space<vmem>>, %arg6: memref<32x32xf32, #tpu.memory_space<vmem>>, %arg7: memref<32x1xf32, #tpu.memory_space<vmem>>, %arg8: memref<4x32x64xf32, #tpu.memory_space<vmem>>, %arg9: memref<2x32xf32, #tpu.memory_space<vmem>>, %arg10: memref<1x4xf32, #tpu.memory_space<vmem>>, %arg11: memref<1x2x4xf32, #tpu.memory_space<vmem>>) attributes {dimension_semantics = [#tpu.dimension_semantics<parallel>], iteration_bounds = array<i64: 1>, scalar_prefetch = 0 : i64, scratch_operands = 0 : i64, tpu.core_type = #tpu.core_type<tc>, window_params = [{transform_indices = @transform_0, window_bounds = array<i64: 1, 8, 263>}, {pipeline_mode = #tpu.pipeline_mode<synchronous>, transform_indices = @transform_1, window_bounds = array<i64: 32, 56>}, {pipeline_mode = #tpu.pipeline_mode<synchronous>, transform_indices = @transform_2, window_bounds = array<i64: 32, 1>}, {pipeline_mode = #tpu.pipeline_mode<synchronous>, transform_indices = @transform_3, window_bounds = array<i64: 256, 79>}, {pipeline_mode = #tpu.pipeline_mode<synchronous>, transform_indices = @transform_4, window_bounds = array<i64: 32, 16>}, {pipeline_mode = #tpu.pipeline_mode<synchronous>, transform_indices = @transform_5, window_bounds = array<i64: 32, 32>}, {pipeline_mode = #tpu.pipeline_mode<synchronous>, transform_indices = @transform_6, window_bounds = array<i64: 32, 1>}, {pipeline_mode = #tpu.pipeline_mode<synchronous>, transform_indices = @transform_7, window_bounds = array<i64: 4, 32, 64>}, {pipeline_mode = #tpu.pipeline_mode<synchronous>, transform_indices = @transform_8, window_bounds = array<i64: 2, 32>}, {pipeline_mode = #tpu.pipeline_mode<synchronous>, transform_indices = @transform_9, window_bounds = array<i64: 1, 4>}, {transform_indices = @transform_10, window_bounds = array<i64: 1, 2, 4>}]} {
    %c0 = arith.constant 0 : index
    %c0_0 = arith.constant 0 : index
    %c0_1 = arith.constant 0 : index
    %0 = vector.load %arg1[%c0, %c0_0, %c0_1] : memref<1x8x263xf32, #tpu.memory_space<vmem>>, vector<1x8x263xf32>
    %1 = vector.shape_cast %0 : vector<1x8x263xf32> to vector<8x263xf32>
    %2 = vector.extract_strided_slice %1 {offsets = [0, 0], sizes = [8, 256], strides = [1, 1]} : vector<8x263xf32> to vector<8x256xf32>
    %3 = vector.extract_strided_slice %1 {offsets = [0, 1], sizes = [8, 256], strides = [1, 1]} : vector<8x263xf32> to vector<8x256xf32>
    %4 = vector.extract_strided_slice %1 {offsets = [0, 2], sizes = [8, 256], strides = [1, 1]} : vector<8x263xf32> to vector<8x256xf32>
    %5 = vector.extract_strided_slice %1 {offsets = [0, 3], sizes = [8, 256], strides = [1, 1]} : vector<8x263xf32> to vector<8x256xf32>
    %6 = vector.extract_strided_slice %1 {offsets = [0, 4], sizes = [8, 256], strides = [1, 1]} : vector<8x263xf32> to vector<8x256xf32>
    %7 = vector.extract_strided_slice %1 {offsets = [0, 5], sizes = [8, 256], strides = [1, 1]} : vector<8x263xf32> to vector<8x256xf32>
    %8 = vector.extract_strided_slice %1 {offsets = [0, 6], sizes = [8, 256], strides = [1, 1]} : vector<8x263xf32> to vector<8x256xf32>
    %9 = tpu.concatenate %2, %3, %4, %5, %6, %7, %8 in 0 : vector<8x256xf32>, vector<8x256xf32>, vector<8x256xf32>, vector<8x256xf32>, vector<8x256xf32>, vector<8x256xf32>, vector<8x256xf32> -> vector<56x256xf32>
    %c0_2 = arith.constant 0 : index
    %c0_3 = arith.constant 0 : index
    %10 = vector.load %arg2[%c0_2, %c0_3] : memref<32x56xf32, #tpu.memory_space<vmem>>, vector<32x56xf32>
    %cst = arith.constant dense<0.000000e+00> : vector<32x256xf32>
    %11 = tpu.matmul %10, %9, %cst {dimension_numbers = #tpu.dot_dimension_numbers<[1], [0], [0], [1], [0, 0, 1, 1], [], []>} : vector<32x56xf32>, vector<56x256xf32>, vector<32x256xf32> -> vector<32x256xf32>
    %c0_4 = arith.constant 0 : index
    %c0_5 = arith.constant 0 : index
    %12 = vector.load %arg3[%c0_4, %c0_5] : memref<32x1xf32, #tpu.memory_space<vmem>>, vector<32x1xf32>
    %13 = vector.broadcast %12 : vector<32x1xf32> to vector<32x256xf32>
    %14 = arith.addf %11, %13 : vector<32x256xf32>
    %cst_6 = arith.constant 0.000000e+00 : f32
    %15 = vector.broadcast %cst_6 : f32 to vector<32x256xf32>
    %16 = arith.cmpf ogt, %14, %15 : vector<32x256xf32>
    %cst_7 = arith.constant 0.000000e+00 : f32
    %17 = vector.broadcast %cst_7 : f32 to vector<32x256xf32>
    %18 = arith.minimumf %14, %17 : vector<32x256xf32>
    %19 = math.exp %18 : vector<32x256xf32>
    %cst_8 = arith.constant 1.000000e+00 : f32
    %20 = vector.broadcast %cst_8 : f32 to vector<32x256xf32>
    %21 = arith.subf %19, %20 : vector<32x256xf32>
    %22 = arith.select %16, %14, %21 : vector<32x256xi1>, vector<32x256xf32>
    %c0_9 = arith.constant 0 : index
    %c0_10 = arith.constant 0 : index
    %23 = vector.load %arg4[%c0_9, %c0_10] : memref<256x79xf32, #tpu.memory_space<vmem>>, vector<256x79xf32>
    %cst_11 = arith.constant dense<0.000000e+00> : vector<32x79xf32>
    %24 = tpu.matmul %22, %23, %cst_11 {dimension_numbers = #tpu.dot_dimension_numbers<[1], [0], [0], [1], [0, 0, 1, 1], [], []>} : vector<32x256xf32>, vector<256x79xf32>, vector<32x79xf32> -> vector<32x79xf32>
    %c0_12 = arith.constant 0 : index
    %c0_13 = arith.constant 0 : index
    %25 = vector.load %arg5[%c0_12, %c0_13] : memref<32x16xf32, #tpu.memory_space<vmem>>, vector<32x16xf32>
    %cst_14 = arith.constant 0.000000e+00 : f32
    %26 = vector.broadcast %cst_14 : f32 to vector<32x64xf32>
    %27 = vector.extract_strided_slice %25 {offsets = [0, 0], sizes = [32, 1], strides = [1, 1]} : vector<32x16xf32> to vector<32x1xf32>
    %28 = vector.extract_strided_slice %24 {offsets = [0, 0], sizes = [32, 64], strides = [1, 1]} : vector<32x79xf32> to vector<32x64xf32>
    %29 = vector.broadcast %27 : vector<32x1xf32> to vector<32x64xf32>
    %30 = arith.mulf %29, %28 : vector<32x64xf32>
    %31 = arith.addf %26, %30 : vector<32x64xf32>
    %32 = vector.extract_strided_slice %25 {offsets = [0, 1], sizes = [32, 1], strides = [1, 1]} : vector<32x16xf32> to vector<32x1xf32>
    %33 = vector.extract_strided_slice %24 {offsets = [0, 1], sizes = [32, 64], strides = [1, 1]} : vector<32x79xf32> to vector<32x64xf32>
    %34 = vector.broadcast %32 : vector<32x1xf32> to vector<32x64xf32>
    %35 = arith.mulf %34, %33 : vector<32x64xf32>
    %36 = arith.addf %31, %35 : vector<32x64xf32>
    %37 = vector.extract_strided_slice %25 {offsets = [0, 2], sizes = [32, 1], strides = [1, 1]} : vector<32x16xf32> to vector<32x1xf32>
    %38 = vector.extract_strided_slice %24 {offsets = [0, 2], sizes = [32, 64], strides = [1, 1]} : vector<32x79xf32> to vector<32x64xf32>
    %39 = vector.broadcast %37 : vector<32x1xf32> to vector<32x64xf32>
    %40 = arith.mulf %39, %38 : vector<32x64xf32>
    %41 = arith.addf %36, %40 : vector<32x64xf32>
    %42 = vector.extract_strided_slice %25 {offsets = [0, 3], sizes = [32, 1], strides = [1, 1]} : vector<32x16xf32> to vector<32x1xf32>
    %43 = vector.extract_strided_slice %24 {offsets = [0, 3], sizes = [32, 64], strides = [1, 1]} : vector<32x79xf32> to vector<32x64xf32>
    %44 = vector.broadcast %42 : vector<32x1xf32> to vector<32x64xf32>
    %45 = arith.mulf %44, %43 : vector<32x64xf32>
    %46 = arith.addf %41, %45 : vector<32x64xf32>
    %47 = vector.extract_strided_slice %25 {offsets = [0, 4], sizes = [32, 1], strides = [1, 1]} : vector<32x16xf32> to vector<32x1xf32>
    %48 = vector.extract_strided_slice %24 {offsets = [0, 4], sizes = [32, 64], strides = [1, 1]} : vector<32x79xf32> to vector<32x64xf32>
    %49 = vector.broadcast %47 : vector<32x1xf32> to vector<32x64xf32>
    %50 = arith.mulf %49, %48 : vector<32x64xf32>
    %51 = arith.addf %46, %50 : vector<32x64xf32>
    %52 = vector.extract_strided_slice %25 {offsets = [0, 5], sizes = [32, 1], strides = [1, 1]} : vector<32x16xf32> to vector<32x1xf32>
    %53 = vector.extract_strided_slice %24 {offsets = [0, 5], sizes = [32, 64], strides = [1, 1]} : vector<32x79xf32> to vector<32x64xf32>
    %54 = vector.broadcast %52 : vector<32x1xf32> to vector<32x64xf32>
    %55 = arith.mulf %54, %53 : vector<32x64xf32>
    %56 = arith.addf %51, %55 : vector<32x64xf32>
    %57 = vector.extract_strided_slice %25 {offsets = [0, 6], sizes = [32, 1], strides = [1, 1]} : vector<32x16xf32> to vector<32x1xf32>
    %58 = vector.extract_strided_slice %24 {offsets = [0, 6], sizes = [32, 64], strides = [1, 1]} : vector<32x79xf32> to vector<32x64xf32>
    %59 = vector.broadcast %57 : vector<32x1xf32> to vector<32x64xf32>
    %60 = arith.mulf %59, %58 : vector<32x64xf32>
    %61 = arith.addf %56, %60 : vector<32x64xf32>
    %62 = vector.extract_strided_slice %25 {offsets = [0, 7], sizes = [32, 1], strides = [1, 1]} : vector<32x16xf32> to vector<32x1xf32>
    %63 = vector.extract_strided_slice %24 {offsets = [0, 7], sizes = [32, 64], strides = [1, 1]} : vector<32x79xf32> to vector<32x64xf32>
    %64 = vector.broadcast %62 : vector<32x1xf32> to vector<32x64xf32>
    %65 = arith.mulf %64, %63 : vector<32x64xf32>
    %66 = arith.addf %61, %65 : vector<32x64xf32>
    %67 = vector.extract_strided_slice %25 {offsets = [0, 8], sizes = [32, 1], strides = [1, 1]} : vector<32x16xf32> to vector<32x1xf32>
    %68 = vector.extract_strided_slice %24 {offsets = [0, 8], sizes = [32, 64], strides = [1, 1]} : vector<32x79xf32> to vector<32x64xf32>
    %69 = vector.broadcast %67 : vector<32x1xf32> to vector<32x64xf32>
    %70 = arith.mulf %69, %68 : vector<32x64xf32>
    %71 = arith.addf %66, %70 : vector<32x64xf32>
    %72 = vector.extract_strided_slice %25 {offsets = [0, 9], sizes = [32, 1], strides = [1, 1]} : vector<32x16xf32> to vector<32x1xf32>
    %73 = vector.extract_strided_slice %24 {offsets = [0, 9], sizes = [32, 64], strides = [1, 1]} : vector<32x79xf32> to vector<32x64xf32>
    %74 = vector.broadcast %72 : vector<32x1xf32> to vector<32x64xf32>
    %75 = arith.mulf %74, %73 : vector<32x64xf32>
    %76 = arith.addf %71, %75 : vector<32x64xf32>
    %77 = vector.extract_strided_slice %25 {offsets = [0, 10], sizes = [32, 1], strides = [1, 1]} : vector<32x16xf32> to vector<32x1xf32>
    %78 = vector.extract_strided_slice %24 {offsets = [0, 10], sizes = [32, 64], strides = [1, 1]} : vector<32x79xf32> to vector<32x64xf32>
    %79 = vector.broadcast %77 : vector<32x1xf32> to vector<32x64xf32>
    %80 = arith.mulf %79, %78 : vector<32x64xf32>
    %81 = arith.addf %76, %80 : vector<32x64xf32>
    %82 = vector.extract_strided_slice %25 {offsets = [0, 11], sizes = [32, 1], strides = [1, 1]} : vector<32x16xf32> to vector<32x1xf32>
    %83 = vector.extract_strided_slice %24 {offsets = [0, 11], sizes = [32, 64], strides = [1, 1]} : vector<32x79xf32> to vector<32x64xf32>
    %84 = vector.broadcast %82 : vector<32x1xf32> to vector<32x64xf32>
    %85 = arith.mulf %84, %83 : vector<32x64xf32>
    %86 = arith.addf %81, %85 : vector<32x64xf32>
    %87 = vector.extract_strided_slice %25 {offsets = [0, 12], sizes = [32, 1], strides = [1, 1]} : vector<32x16xf32> to vector<32x1xf32>
    %88 = vector.extract_strided_slice %24 {offsets = [0, 12], sizes = [32, 64], strides = [1, 1]} : vector<32x79xf32> to vector<32x64xf32>
    %89 = vector.broadcast %87 : vector<32x1xf32> to vector<32x64xf32>
    %90 = arith.mulf %89, %88 : vector<32x64xf32>
    %91 = arith.addf %86, %90 : vector<32x64xf32>
    %92 = vector.extract_strided_slice %25 {offsets = [0, 13], sizes = [32, 1], strides = [1, 1]} : vector<32x16xf32> to vector<32x1xf32>
    %93 = vector.extract_strided_slice %24 {offsets = [0, 13], sizes = [32, 64], strides = [1, 1]} : vector<32x79xf32> to vector<32x64xf32>
    %94 = vector.broadcast %92 : vector<32x1xf32> to vector<32x64xf32>
    %95 = arith.mulf %94, %93 : vector<32x64xf32>
    %96 = arith.addf %91, %95 : vector<32x64xf32>
    %97 = vector.extract_strided_slice %25 {offsets = [0, 14], sizes = [32, 1], strides = [1, 1]} : vector<32x16xf32> to vector<32x1xf32>
    %98 = vector.extract_strided_slice %24 {offsets = [0, 14], sizes = [32, 64], strides = [1, 1]} : vector<32x79xf32> to vector<32x64xf32>
    %99 = vector.broadcast %97 : vector<32x1xf32> to vector<32x64xf32>
    %100 = arith.mulf %99, %98 : vector<32x64xf32>
    %101 = arith.addf %96, %100 : vector<32x64xf32>
    %102 = vector.extract_strided_slice %25 {offsets = [0, 15], sizes = [32, 1], strides = [1, 1]} : vector<32x16xf32> to vector<32x1xf32>
    %103 = vector.extract_strided_slice %24 {offsets = [0, 15], sizes = [32, 64], strides = [1, 1]} : vector<32x79xf32> to vector<32x64xf32>
    %104 = vector.broadcast %102 : vector<32x1xf32> to vector<32x64xf32>
    %105 = arith.mulf %104, %103 : vector<32x64xf32>
    %106 = arith.addf %101, %105 : vector<32x64xf32>
    %c0_15 = arith.constant 0 : index
    %c0_16 = arith.constant 0 : index
    %107 = vector.load %arg6[%c0_15, %c0_16] : memref<32x32xf32, #tpu.memory_space<vmem>>, vector<32x32xf32>
    %cst_17 = arith.constant dense<0.000000e+00> : vector<32x64xf32>
    %108 = tpu.matmul %107, %106, %cst_17 {dimension_numbers = #tpu.dot_dimension_numbers<[1], [0], [0], [1], [0, 0, 1, 1], [], []>} : vector<32x32xf32>, vector<32x64xf32>, vector<32x64xf32> -> vector<32x64xf32>
    %c0_18 = arith.constant 0 : index
    %c0_19 = arith.constant 0 : index
    %109 = vector.load %arg7[%c0_18, %c0_19] : memref<32x1xf32, #tpu.memory_space<vmem>>, vector<32x1xf32>
    %110 = vector.broadcast %109 : vector<32x1xf32> to vector<32x64xf32>
    %111 = arith.addf %108, %110 : vector<32x64xf32>
    %cst_20 = arith.constant 0.000000e+00 : f32
    %112 = vector.broadcast %cst_20 : f32 to vector<32x64xf32>
    %113 = arith.cmpf ogt, %111, %112 : vector<32x64xf32>
    %cst_21 = arith.constant 0.000000e+00 : f32
    %114 = vector.broadcast %cst_21 : f32 to vector<32x64xf32>
    %115 = arith.minimumf %111, %114 : vector<32x64xf32>
    %116 = math.exp %115 : vector<32x64xf32>
    %cst_22 = arith.constant 1.000000e+00 : f32
    %117 = vector.broadcast %cst_22 : f32 to vector<32x64xf32>
    %118 = arith.subf %116, %117 : vector<32x64xf32>
    %119 = arith.select %113, %111, %118 : vector<32x64xi1>, vector<32x64xf32>
    %c0_23 = arith.constant 0 : index
    %c0_24 = arith.constant 0 : index
    %c0_25 = arith.constant 0 : index
    %120 = vector.load %arg8[%c0_23, %c0_24, %c0_25] : memref<4x32x64xf32, #tpu.memory_space<vmem>>, vector<1x32x64xf32>
    %121 = vector.shape_cast %120 : vector<1x32x64xf32> to vector<32x64xf32>
    %122 = arith.mulf %119, %121 : vector<32x64xf32>
    %cst_26 = arith.constant dense<0.000000e+00> : vector<32xf32>
    %123 = vector.multi_reduction <add>, %122, %cst_26 [1] : vector<32x64xf32> to vector<32xf32>
    %124 = vector.shape_cast %123 : vector<32xf32> to vector<32x1xf32>
    %c1 = arith.constant 1 : index
    %c0_27 = arith.constant 0 : index
    %c0_28 = arith.constant 0 : index
    %125 = vector.load %arg8[%c1, %c0_27, %c0_28] : memref<4x32x64xf32, #tpu.memory_space<vmem>>, vector<1x32x64xf32>
    %126 = vector.shape_cast %125 : vector<1x32x64xf32> to vector<32x64xf32>
    %127 = arith.mulf %119, %126 : vector<32x64xf32>
    %cst_29 = arith.constant dense<0.000000e+00> : vector<32xf32>
    %128 = vector.multi_reduction <add>, %127, %cst_29 [1] : vector<32x64xf32> to vector<32xf32>
    %129 = vector.shape_cast %128 : vector<32xf32> to vector<32x1xf32>
    %c2 = arith.constant 2 : index
    %c0_30 = arith.constant 0 : index
    %c0_31 = arith.constant 0 : index
    %130 = vector.load %arg8[%c2, %c0_30, %c0_31] : memref<4x32x64xf32, #tpu.memory_space<vmem>>, vector<1x32x64xf32>
    %131 = vector.shape_cast %130 : vector<1x32x64xf32> to vector<32x64xf32>
    %132 = arith.mulf %119, %131 : vector<32x64xf32>
    %cst_32 = arith.constant dense<0.000000e+00> : vector<32xf32>
    %133 = vector.multi_reduction <add>, %132, %cst_32 [1] : vector<32x64xf32> to vector<32xf32>
    %134 = vector.shape_cast %133 : vector<32xf32> to vector<32x1xf32>
    %c3 = arith.constant 3 : index
    %c0_33 = arith.constant 0 : index
    %c0_34 = arith.constant 0 : index
    %135 = vector.load %arg8[%c3, %c0_33, %c0_34] : memref<4x32x64xf32, #tpu.memory_space<vmem>>, vector<1x32x64xf32>
    %136 = vector.shape_cast %135 : vector<1x32x64xf32> to vector<32x64xf32>
    %137 = arith.mulf %119, %136 : vector<32x64xf32>
    %cst_35 = arith.constant dense<0.000000e+00> : vector<32xf32>
    %138 = vector.multi_reduction <add>, %137, %cst_35 [1] : vector<32x64xf32> to vector<32xf32>
    %139 = vector.shape_cast %138 : vector<32xf32> to vector<32x1xf32>
    %140 = tpu.concatenate %124, %129, %134, %139 in 1 : vector<32x1xf32>, vector<32x1xf32>, vector<32x1xf32>, vector<32x1xf32> -> vector<32x4xf32>
    %c0_36 = arith.constant 0 : index
    %c0_37 = arith.constant 0 : index
    %141 = vector.load %arg9[%c0_36, %c0_37] : memref<2x32xf32, #tpu.memory_space<vmem>>, vector<2x32xf32>
    %cst_38 = arith.constant dense<0.000000e+00> : vector<2x4xf32>
    %142 = tpu.matmul %141, %140, %cst_38 {dimension_numbers = #tpu.dot_dimension_numbers<[1], [0], [0], [1], [0, 0, 1, 1], [], []>} : vector<2x32xf32>, vector<32x4xf32>, vector<2x4xf32> -> vector<2x4xf32>
    %c0_39 = arith.constant 0 : index
    %c0_40 = arith.constant 0 : index
    %143 = vector.load %arg10[%c0_39, %c0_40] : memref<1x4xf32, #tpu.memory_space<vmem>>, vector<1x4xf32>
    %144 = vector.broadcast %143 : vector<1x4xf32> to vector<2x4xf32>
    %145 = arith.addf %142, %144 : vector<2x4xf32>
    %cst_41 = arith.constant dense<0xFF800000> : vector<2xf32>
    %146 = vector.multi_reduction <maximumf>, %145, %cst_41 [1] : vector<2x4xf32> to vector<2xf32>
    %147 = vector.shape_cast %146 : vector<2xf32> to vector<2x1xf32>
    %148 = vector.broadcast %147 : vector<2x1xf32> to vector<2x4xf32>
    %149 = arith.subf %145, %148 : vector<2x4xf32>
    %150 = math.exp %149 : vector<2x4xf32>
    %cst_42 = arith.constant dense<0.000000e+00> : vector<2xf32>
    %151 = vector.multi_reduction <add>, %150, %cst_42 [1] : vector<2x4xf32> to vector<2xf32>
    %152 = vector.shape_cast %151 : vector<2xf32> to vector<2x1xf32>
    %153 = vector.broadcast %152 : vector<2x1xf32> to vector<2x4xf32>
    %154 = arith.divf %150, %153 : vector<2x4xf32>
    %c0_43 = arith.constant 0 : index
    %c0_44 = arith.constant 0 : index
    %c0_45 = arith.constant 0 : index
    %155 = vector.load %arg11[%c0_43, %c0_44, %c0_45] : memref<1x2x4xf32, #tpu.memory_space<vmem>>, vector<1x2x4xf32>
    %156 = vector.shape_cast %155 : vector<1x2x4xf32> to vector<2x4xf32>
    %157 = vector.shape_cast %154 : vector<2x4xf32> to vector<1x2x4xf32>
    tpu.vector_store %arg11[%c0_43, %c0_44, %c0_45], %157 {strides = array<i32>} : memref<1x2x4xf32, #tpu.memory_space<vmem>>, vector<1x2x4xf32>,
    return
  }
  func.func @transform_0(%arg0: i32) -> (i32, i32, i32) {
    %c0_i32 = arith.constant 0 : i32
    %c0_i32_0 = arith.constant 0 : i32
    %c0_i32_1 = arith.constant 0 : i32
    return %arg0, %c0_i32, %c0_i32_0 : i32, i32, i32
  }
  func.func @transform_1(%arg0: i32) -> (i32, i32) {
    %c0_i32 = arith.constant 0 : i32
    %c0_i32_0 = arith.constant 0 : i32
    %c0_i32_1 = arith.constant 0 : i32
    return %c0_i32, %c0_i32_0 : i32, i32
  }
  func.func @transform_2(%arg0: i32) -> (i32, i32) {
    %c0_i32 = arith.constant 0 : i32
    %c0_i32_0 = arith.constant 0 : i32
    %c0_i32_1 = arith.constant 0 : i32
    return %c0_i32, %c0_i32_0 : i32, i32
  }
  func.func @transform_3(%arg0: i32) -> (i32, i32) {
    %c0_i32 = arith.constant 0 : i32
    %c0_i32_0 = arith.constant 0 : i32
    %c0_i32_1 = arith.constant 0 : i32
    return %c0_i32, %c0_i32_0 : i32, i32
  }
  func.func @transform_4(%arg0: i32) -> (i32, i32) {
    %c0_i32 = arith.constant 0 : i32
    %c0_i32_0 = arith.constant 0 : i32
    %c0_i32_1 = arith.constant 0 : i32
    return %c0_i32, %c0_i32_0 : i32, i32
  }
  func.func @transform_5(%arg0: i32) -> (i32, i32) {
    %c0_i32 = arith.constant 0 : i32
    %c0_i32_0 = arith.constant 0 : i32
    %c0_i32_1 = arith.constant 0 : i32
    return %c0_i32, %c0_i32_0 : i32, i32
  }
  func.func @transform_6(%arg0: i32) -> (i32, i32) {
    %c0_i32 = arith.constant 0 : i32
    %c0_i32_0 = arith.constant 0 : i32
    %c0_i32_1 = arith.constant 0 : i32
    return %c0_i32, %c0_i32_0 : i32, i32
  }
  func.func @transform_7(%arg0: i32) -> (i32, i32, i32) {
    %c0_i32 = arith.constant 0 : i32
    %c0_i32_0 = arith.constant 0 : i32
    %c0_i32_1 = arith.constant 0 : i32
    %c0_i32_2 = arith.constant 0 : i32
    return %c0_i32, %c0_i32_0, %c0_i32_1 : i32, i32, i32
  }
  func.func @transform_8(%arg0: i32) -> (i32, i32) {
    %c0_i32 = arith.constant 0 : i32
    %c0_i32_0 = arith.constant 0 : i32
    %c0_i32_1 = arith.constant 0 : i32
    return %c0_i32, %c0_i32_0 : i32, i32
  }
  func.func @transform_9(%arg0: i32) -> (i32, i32) {
    %c0_i32 = arith.constant 0 : i32
    %c0_i32_0 = arith.constant 0 : i32
    %c0_i32_1 = arith.constant 0 : i32
    return %c0_i32, %c0_i32_0 : i32, i32
  }
  func.func @transform_10(%arg0: i32) -> (i32, i32, i32) {
    %c0_i32 = arith.constant 0 : i32
    %c0_i32_0 = arith.constant 0 : i32
    %c0_i32_1 = arith.constant 0 : i32
    return %arg0, %c0_i32, %c0_i32_0 : i32, i32, i32
  }
}

</mosaic_0001>

<bundles_post_ra>
// kernel: tpu_custom_call.1
= control target key start
LH: loop header
LB: loop body
LE: loop exit
PB: predicated region body
PF: predicated region fallthrough
CT: control target
= control target key end

     0   :  { %v1445_v3 = vmov 0   ;;  %s2222_s0 = inlined_call_operand.vmem [shape: f32[1,8,263], index: 0, kind: input, shape index: {}]   ;;  %s2223_s1 = inlined_call_operand.vmem [shape: f32[32,56], index: 1, kind: input, shape index: {}]   ;;  %s2224_s2 = inlined_call_operand.vmem [shape: f32[32,1], index: 2, kind: input, shape index: {}]   ;;  %s2225_s3 = inlined_call_operand.vmem [shape: f32[256,79], index: 3, kind: input, shape index: {}]   ;;  %s2226_s4 = inlined_call_operand.vmem [shape: f32[32,16], index: 4, kind: input, shape index: {}]   ;;  %s2227_s5 = inlined_call_operand.vmem [shape: f32[32,32], index: 5, kind: input, shape index: {}]   ;;  %s2228_s6 = inlined_call_operand.vmem [shape: f32[32,1], index: 6, kind: input, shape index: {}]   ;;  %s2229_s7 = inlined_call_operand.vmem [shape: f32[4,32,64], index: 7, kind: input, shape index: {}]   ;;  %s2230_s8 = inlined_call_operand.vmem [shape: f32[2,32], index: 8, kind: input, shape index: {}]   ;;  %s2231_s9 = inlined_call_operand.vmem [shape: f32[1,4], index: 9, kind: input, shape index: {}]   ;;  %s2232_s10 = inlined_call_operand.hbm [shape: f32[1,2,4], index: 10, kind: output, shape index: {}]  }
   0x1   :  { %v1535_v0 = vld [vmem:[%s2222_s0] sm:$0xff]  ;;  %v1540_v1 = vld [vmem:[%s2222_s0 + $0x8] sm:$0xff]  ;;  %1344 = vset.pattern.permute.xlu1 %v1445_v3  ;;  %1345 = vset.pattern.permute.xlu2 %v1445_v3 }
   0x2   :  { %v1318_v2 = vpack.i.bf16 %v1540_v1, %v1535_v0  ;;  %1343 = vset.pattern.permute.xlu0 %v1445_v3 }
   0x3   :  { %15 = vsyncpa [#allocation3], 0  ;;  %s1446_s17 = smov 123   ;;  %s1447_s18 = smov 122   ;;  %v38_v4 = vld [vmem:[%s2222_s0 + $0x10] sm:$0xff]  ;;  %v113_v5 = vld [vmem:[%s2224_s2 + $0x8] sm:$0xff] }
   0x4   :  { %1319 = vrot.lane.b32.xlu1 %v1318_v2, %s1446_s17  ;;  %1314 = vrot.lane.b32.xlu0 %v1318_v2, %s1447_s18  ;;  %s1448_s19 = smov 124   ;;  %s1449_s22 = smov 125   ;;  %v115_v6 = vld [vmem:[%s2224_s2 + $0x18] sm:$0xff]  ;;  %v1571_v7 = vld [vmem:[%s2226_s4 + $0x10] sm:$0xff]  ;;  %v1452_v9 = vmov 1   ;;  %v1453_v11 = vmov 2  }
   0x5   :  { %1324 = vrot.lane.b32.xlu2 %v1318_v2, %s1448_s19  ;;  %s1450_s23 = smov 126   ;;  %s1451_s24 = smov 127   ;;  %v1577_v8 = vld [vmem:[%s2226_s4 + $0x8] sm:$0xff]  ;;  %v1584_v10 = vld [vmem:[%s2226_s4 + $0x18] sm:$0xff]  ;;  %v114_v12 = vld [vmem:[%s2224_s2 + $0x10] sm:$0xff]  ;;  %v1454_v13 = vmov 3  }
   0x6   :  { %v1598_v14 = vld [vmem:[%s2226_s4] sm:$0xff]  ;;  %vm103_vm0 = vcmask 998400   ;;  %vm92_vm1 = vcmask 1006592   ;;  %vm81_vm2 = vcmask 1014784   ;;  %v1455_v26 = vmov 5   ;;  %v109_v55 = vld [vmem:[%s2223_s1 + $0x8] sm:$0xff] }
   0x7   :  { %v112_v29 = vld [vmem:[%s2224_s2] sm:$0xff]  ;;  %vm70_vm3 = vcmask 1022976   ;;  %vm59_vm4 = vcmask 1031168   ;;  %vm48_vm5 = vcmask 1039360   ;;  %vm136_vm6 = vcmask 457728   ;;  %v110_v57 = vld [vmem:[%s2223_s1 + $0x10] sm:$0xff] }
   0x8   :  { %v108_v53 = vld [vmem:[%s2223_s1] sm:$0xff]  ;;  %v1456_v54 = vmov 4   ;;  %v1457_v56 = vmov 7   ;;  %v111_v58 = vld [vmem:[%s2223_s1 + $0x18] sm:$0xff]  ;;  %v1458_v59 = vmov 6   ;;  %v1459_v60 = vmov 9  }
   0x9   :  { %v1460_v61 = vmov 8   ;;  %v270_v62 = vld [vmem:[%s2225_s3 + $0x78] sm:$0xff]  ;;  %s1468_s2 = smov 117   ;;  %s1469_s0 = smov 119   ;;  %vm1005_vm15 = vcmask 261120  }
   0xa   :  { %v286_v63 = vld [vmem:[%s2225_s3 + $0xf8] sm:$0xff]  ;;  %287 = vmatpush.msra.mxu2 %v270_v62  ;;  %s1470_s25 = smov 116   ;;  %s1471_s26 = smov 121  }
   0xb   :  { %316 = vmatpush.msra.mxu3 %v286_v63  ;;  %s1472_s27 = smov 118   ;;  %s1473_s28 = smov 115  }
   0xc   :  { %90 = vrot.lane.b32.xlu1 %v38_v4, %s1446_s17  ;;  %101 = vrot.lane.b32.xlu0 %v38_v4, %s1447_s18  ;;  %s1474_s29 = smov 114   ;;  %s1475_s30 = smov 113  }
   0xd   :  { %79 = vrot.lane.b32.xlu2 %v38_v4, %s1448_s19 }
  0x14   :  { %68 = vrot.lane.b32.xlu1 %v38_v4, %s1449_s22  ;;  %1329 = vrot.lane.b32.xlu0 %v1318_v2, %s1449_s22 }
  0x15   :  { %1334 = vrot.lane.b32.xlu2 %v1318_v2, %s1450_s23 }
  0x1c   :  { %1339 = vrot.lane.b32.xlu1 %v1318_v2, %s1451_s24  ;;  %57 = vrot.lane.b32.xlu0 %v38_v4, %s1450_s23  ;;  %v268_v2 = vld [vmem:[%s2225_s3 + $0x68] sm:$0xff] }
  0x1d   :  { %46 = vrot.lane.b32.xlu2 %v38_v4, %s1451_s24  ;;  %v284_v4 = vld [vmem:[%s2225_s3 + $0xe8] sm:$0xff] }
  0x24   :  { %123 = vperm.xlu1 %1344, %v113_v5   ;;  %118 = vperm.xlu0 %1343, %v112_v29   ;;  %v1461_v5 = vmov 11  }
  0x25   :  { %128 = vperm.xlu2 %1345, %v114_v12   ;;  %v282_v12 = vld [vmem:[%s2225_s3 + $0xd8] sm:$0xff] }
  0x2c   :  { %133 = vperm.xlu1 %1344, %v115_v6   ;;  %1346 = vset.pattern.permute.xlu0 %v1452_v9  ;;  %v267_v6 = vld [vmem:[%s2225_s3 + $0x60] sm:$0xff] }
  0x2d   :  { %351 = vperm.xlu2 %1345, %v1598_v14   ;;  %378 = vperm.xlu0 %1346, %v1598_v14  }
  0x34   :  { %361 = vperm.xlu1 %1344, %v1571_v7  }
  0x35   :  { %366 = vperm.xlu2 %1345, %v1584_v10   ;;  %1349 = vset.pattern.permute.xlu0 %v1453_v11 }
  0x36   :  { %418 = vperm.xlu0 %1349, %v1598_v14  }
  0x3c   :  { %1347 = vset.pattern.permute.xlu1 %v1452_v9 }
  0x3d   :  { %382 = vperm.xlu1 %1347, %v1577_v8   ;;  %1348 = vset.pattern.permute.xlu2 %v1452_v9  ;;  %v283_v9 = vld [vmem:[%s2225_s3 + $0xe0] sm:$0xff] }
  0x3e   :  { %386 = vperm.xlu2 %1348, %v1571_v7   ;;  %1354 = vset.pattern.permute.xlu0 %v1456_v54 }
  0x3f   :  { %510 = vperm.xlu0 %1354, %v1584_v10  }
  0x45   :  { %390 = vperm.xlu1 %1347, %v1584_v10  }
  0x46   :  { %1351 = vset.pattern.permute.xlu2 %v1453_v11 }
  0x47   :  { %426 = vperm.xlu2 %1351, %v1571_v7   ;;  %502 = vperm.xlu0 %1354, %v1577_v8  }
  0x4d   :  { %1350 = vset.pattern.permute.xlu1 %v1453_v11  ;;  %v266_v11 = vld [vmem:[%s2225_s3 + $0x58] sm:$0xff] }
  0x4e   :  { %422 = vperm.xlu1 %1350, %v1577_v8  }
  0x4f   :  { %1353 = vset.pattern.permute.xlu2 %v1454_v13  ;;  %498 = vperm.xlu0 %1354, %v1598_v14  }
  0x50   :  { %466 = vperm.xlu2 %1353, %v1571_v7  }
  0x56   :  { %430 = vperm.xlu1 %1350, %v1584_v10  }
  0x57   :  { %1359 = vset.pattern.permute.xlu0 %v1457_v56 }
  0x58   :  { %1355 = vset.pattern.permute.xlu2 %v1456_v54  ;;  %630 = vperm.xlu0 %1359, %v1584_v10  }
  0x59   :  { %506 = vperm.xlu2 %1355, %v1571_v7  }
  0x5e   :  { %1352 = vset.pattern.permute.xlu1 %v1454_v13 }
  0x5f   :  { %470 = vperm.xlu1 %1352, %v1584_v10   ;;  %v1325_v15 = vpop.permute.xlu2 %1324 }
  0x60   :  { %v1327_v22 = vunpack.i.h.bf16 %v1325_v15  ;;  %v1326_v23 = vunpack.i.l.bf16 %v1325_v15  ;;  %1362 = vset.pattern.permute.xlu0 %v1458_v59  ;;  %v281_v15 = vld [vmem:[%s2225_s3 + $0xd0] sm:$0xff] }
  0x61   :  { %1357 = vset.pattern.permute.xlu2 %v1454_v13  ;;  %578 = vperm.xlu0 %1362, %v1598_v14   ;;  %v265_v13 = vld [vmem:[%s2225_s3 + $0x50] sm:$0xff] }
  0x62   :  { %v82_v28 = vsel %vm81_vm2, %v1326_v23, %v1327_v22  ;;  %458 = vperm.xlu2 %1357, %v1598_v14  }
  0x67   :  { %462 = vperm.xlu1 %1352, %v1577_v8   ;;  %v80_v25 = vpop.permute.xlu2 %79 }
  0x68   :  { %v83_v35 = vsel %vm81_vm2, %v1327_v22, %v80_v25  ;;  %v1463_v22 = vmov 12  }
  0x69   :  { %1365 = vset.pattern.permute.xlu0 %v1460_v61 }
  0x6a   :  { %1358 = vset.pattern.permute.xlu2 %v1458_v59  ;;  %662 = vperm.xlu0 %1365, %v1577_v8  }
  0x6b   :  { %590 = vperm.xlu2 %1358, %v1584_v10  }
  0x6f   :  { %1356 = vset.pattern.permute.xlu1 %v1455_v26  ;;  %v1335_v34 = vpop.permute.xlu2 %1334  ;;  %v1464_v26 = vmov 14  }
  0x70   :  { %550 = vperm.xlu1 %1356, %v1584_v10   ;;  %v1337_v36 = vunpack.i.h.bf16 %v1335_v34  ;;  %v1336_v37 = vunpack.i.l.bf16 %v1335_v34 }
  0x72   :  { %v60_v44 = vsel %vm59_vm4, %v1336_v37, %v1337_v36  ;;  %v258_v37 = vld [vmem:[%s2225_s3 + $0x18] sm:$0xff] }
  0x73   :  { %586 = vperm.xlu2 %1358, %v1571_v7  }
  0x76   :  { %v1320_v16 = vpop.permute.xlu1 %1319  ;;  %v1315_v17 = vpop.permute.xlu0 %1314 }
  0x77   :  { %v1322_v18 = vunpack.i.h.bf16 %v1320_v16  ;;  %v1321_v19 = vunpack.i.l.bf16 %v1320_v16  ;;  %v1317_v20 = vunpack.i.h.bf16 %v1315_v17  ;;  %v1316_v21 = vunpack.i.l.bf16 %v1315_v17  ;;  %v47_v45 = vpop.permute.xlu2 %46  ;;  %v264_v16 = vld [vmem:[%s2225_s3 + $0x48] sm:$0xff] }
  0x78   :  { %546 = vperm.xlu1 %1356, %v1571_v7   ;;  %v280_v17 = vld [vmem:[%s2225_s3 + $0xc8] sm:$0xff] }
  0x79   :  { %v104_v24 = vsel %vm103_vm0, %v1316_v21, %v1317_v20  ;;  %v93_v27 = vsel %vm92_vm1, %v1321_v19, %v1322_v18  ;;  %v1462_v19 = vmov 10  }
  0x7a   :  { %158 = vmatpush.msra.mxu0 %v104_v24  ;;  %1369 = vset.pattern.permute.xlu0 %v1462_v19 }
  0x7b   :  { %582 = vperm.xlu2 %1358, %v1577_v8   ;;  %746 = vperm.xlu0 %1369, %v1571_v7  }
  0x7c   :  { %159 = vmatpush.msra.mxu0 %v93_v27  ;;  %v262_v27 = vld [vmem:[%s2225_s3 + $0x38] sm:$0xff] }
  0x7e   :  { %v91_v30 = vpop.permute.xlu1 %90  ;;  %v102_v31 = vpop.permute.xlu0 %101  ;;  %160 = vmatpush.msra.mxu0 %v82_v28  ;;  %v278_v28 = vld [vmem:[%s2225_s3 + $0xb8] sm:$0xff] }
  0x7f   :  { %v105_v32 = vsel %vm103_vm0, %v1317_v20, %v102_v31  ;;  %v94_v33 = vsel %vm92_vm1, %v1322_v18, %v91_v30  ;;  %v263_v18 = vld [vmem:[%s2225_s3 + $0x40] sm:$0xff]  ;;  %v1743_v25 = vpop.permute.xlu2 %128  ;;  %v261_v30 = vld [vmem:[%s2225_s3 + $0x30] sm:$0xff]  ;;  %vm1079_vm1 = vcmask 523264  }
  0x80   :  { %187 = vmatpush.msra.mxu1 %v105_v32  ;;  %542 = vperm.xlu1 %1356, %v1577_v8   ;;  %v279_v20 = vld [vmem:[%s2225_s3 + $0xc0] sm:$0xff]  ;;  %v277_v31 = vld [vmem:[%s2225_s3 + $0xb0] sm:$0xff]  ;;  %v260_v32 = vld [vmem:[%s2225_s3 + $0x28] sm:$0xff] }
  0x82   :  { %188 = vmatpush.msra.mxu1 %v94_v33  ;;  %v276_v33 = vld [vmem:[%s2225_s3 + $0xa8] sm:$0xff] }
  0x83   :  { %1361 = vset.pattern.permute.xlu2 %v1460_v61  ;;  %1373 = vset.pattern.permute.xlu0 %v1463_v22 }
  0x84   :  { %189 = vmatpush.msra.mxu1 %v83_v35  ;;  %670 = vperm.xlu2 %1361, %v1584_v10   ;;  %v259_v35 = vld [vmem:[%s2225_s3 + $0x20] sm:$0xff] }
  0x85   :  { %830 = vperm.xlu0 %1373, %v1584_v10  }
  0x86   :  { %v69_v38 = vpop.permute.xlu1 %68  ;;  %v1330_v39 = vpop.permute.xlu0 %1329 }
  0x87   :  { %v1332_v40 = vunpack.i.h.bf16 %v1330_v39  ;;  %v1331_v41 = vunpack.i.l.bf16 %v1330_v39  ;;  %v1769_v34 = vpop.permute.xlu2 %351  ;;  %v257_v39 = vld [vmem:[%s2225_s3 + $0x10] sm:$0xff] }
  0x88   :  { %538 = vperm.xlu1 %1356, %v1598_v14  }
  0x89   :  { %v71_v42 = vsel %vm70_vm3, %v1331_v41, %v1332_v40  ;;  %v72_v43 = vsel %vm70_vm3, %v1332_v40, %v69_v38  ;;  %v274_v38 = vld [vmem:[%s2225_s3 + $0x98] sm:$0xff]  ;;  %v273_v40 = vld [vmem:[%s2225_s3 + $0x90] sm:$0xff] }
  0x8a   :  { %161 = vmatpush.msra.mxu0 %v71_v42  ;;  %190 = vmatpush.msra.mxu1 %v72_v43  ;;  %v256_v42 = vld [vmem:[%s2225_s3 + $0x8] sm:$0xff] }
  0x8b   :  { %v272_v43 = vld [vmem:[%s2225_s3 + $0x88] sm:$0xff] }
  0x8c   :  { %162 = vmatpush.msra.mxu0 %v60_v44  ;;  %666 = vperm.xlu2 %1361, %v1571_v7   ;;  %v255_v44 = vld [vmem:[%s2225_s3] sm:$0xff] }
  0x8d   :  { %1376 = vset.pattern.permute.xlu0 %v1461_v5 }
  0x8e   :  { %v1340_v46 = vpop.permute.xlu1 %1339  ;;  %v58_v47 = vpop.permute.xlu0 %57  ;;  %778 = vperm.xlu0 %1376, %v1598_v14  }
  0x8f   :  { %v1342_v48 = vunpack.i.h.bf16 %v1340_v46  ;;  %v1341_v49 = vunpack.i.l.bf16 %v1340_v46  ;;  %v61_v50 = vsel %vm59_vm4, %v1337_v36, %v58_v47  ;;  %v275_v36 = vld [vmem:[%s2225_s3 + $0xa0] sm:$0xff]  ;;  %v1806_v46 = vpop.permute.xlu2 %366  ;;  %v1465_v47 = vmov 13  }
  0x90   :  { %191 = vmatpush.msra.mxu1 %v61_v50  ;;  %1360 = vset.pattern.permute.xlu1 %v1457_v56 }
  0x91   :  { %v49_v51 = vsel %vm48_vm5, %v1341_v49, %v1342_v48  ;;  %v50_v52 = vsel %vm48_vm5, %v1342_v48, %v47_v45  ;;  %626 = vperm.xlu1 %1360, %v1571_v7   ;;  %v271_v45 = vld [vmem:[%s2225_s3 + $0x80] sm:$0xff]  ;;  %vm1155_vm5 = vcmask 7168  }
  0x92   :  { %163 = vmatpush.msra.mxu0 %v49_v51  ;;  %192 = vmatpush.msra.mxu1 %v50_v52 }
  0x94   :  { %164 = vmatpush.msra.mxu0 %v1535_v0  ;;  %193 = vmatpush.msra.mxu1 %v1540_v1  ;;  %v269_v0 = vld [vmem:[%s2225_s3 + $0x70] sm:$0xff] }
  0x95   :  { %1240 = vmatmul.msk.f32.vlgmr.msra.gmra.mxu0 %vm136_vm6, %v108_v53  ;;  %1244 = vmatmul.msk.f32.vlgmr.msra.gmra.mxu1 %vm136_vm6, %v108_v53  ;;  %v285_v1 = vld [vmem:[%s2225_s3 + $0xf0] sm:$0xff]  ;;  %s1467_s3 = smov 120  }
  0x96   :  { %288 = vmatpush.msra.mxu2 %v269_v0  ;;  %317 = vmatpush.msra.mxu3 %v285_v1  ;;  %v1726_v21 = vpop.permute.xlu1 %123  ;;  %v119_v50 = vpop.permute.xlu0 %118 }
  0x97   :  { %1364 = vset.pattern.permute.xlu2 %v1457_v56  ;;  %1379 = vset.pattern.permute.xlu0 %v1465_v47 }
  0x98   :  { %289 = vmatpush.msra.mxu2 %v268_v2  ;;  %318 = vmatpush.msra.mxu3 %v284_v4  ;;  %v1813_v49 = vpop.permute.xlu2 %386 }
  0x99   :  { %622 = vperm.xlu1 %1360, %v1577_v8   ;;  %618 = vperm.xlu2 %1364, %v1598_v14  }
  0x9a   :  { %290 = vmatpush.msra.mxu2 %v267_v6  ;;  %319 = vmatpush.msra.mxu3 %v283_v9 }
  0x9b   :  { %862 = vperm.xlu0 %1379, %v1577_v8  }
  0x9c   :  { %291 = vmatpush.msra.mxu2 %v266_v11  ;;  %320 = vmatpush.msra.mxu3 %v282_v12 }
  0x9d   :  { %1241 = vmatmul.msk.f32.gmra.mxu0 %vm136_vm6, %v109_v55  ;;  %1245 = vmatmul.msk.f32.gmra.mxu1 %vm136_vm6, %v109_v55 }
  0x9e   :  { %292 = vmatpush.msra.mxu2 %v265_v13  ;;  %321 = vmatpush.msra.mxu3 %v281_v15  ;;  %v1733_v23 = vpop.permute.xlu1 %133 }
  0xa0   :  { %293 = vmatpush.msra.mxu2 %v264_v16  ;;  %322 = vmatpush.msra.mxu3 %v280_v17 }
  0xa1   :  { %1363 = vset.pattern.permute.xlu1 %v1459_v60  ;;  %1366 = vset.pattern.permute.xlu2 %v1462_v19  ;;  %v1823_v59 = vpop.permute.xlu2 %426 }
  0xa2   :  { %710 = vperm.xlu1 %1363, %v1584_v10   ;;  %294 = vmatpush.msra.mxu2 %v263_v18 }
  0xa3   :  { %323 = vmatpush.msra.mxu3 %v279_v20  ;;  %750 = vperm.xlu2 %1366, %v1584_v10  }
  0xa4   :  { %295 = vmatpush.msra.mxu2 %v262_v27 }
  0xa5   :  { %1242 = vmatmul.msk.f32.gmra.mxu0 %vm136_vm6, %v110_v57  ;;  %1246 = vmatmul.msk.f32.gmra.mxu1 %vm136_vm6, %v110_v57 }
  0xa6   :  { %v1741_v24 = vpop.permute.xlu1 %361  ;;  %324 = vmatpush.msra.mxu3 %v278_v28  ;;  %296 = vmatpush.msra.mxu2 %v261_v30 }
  0xa8   :  { %325 = vmatpush.msra.mxu3 %v277_v31  ;;  %297 = vmatpush.msra.mxu2 %v260_v32 }
  0xaa   :  { %706 = vperm.xlu1 %1363, %v1571_v7   ;;  %326 = vmatpush.msra.mxu3 %v276_v33  ;;  %v1835_v13 = vpop.permute.xlu2 %466 }
  0xab   :  { %1368 = vset.pattern.permute.xlu2 %v1459_v60  ;;  %298 = vmatpush.msra.mxu2 %v259_v35 }
  0xac   :  { %702 = vperm.xlu2 %1368, %v1577_v8   ;;  %327 = vmatpush.msra.mxu3 %v275_v36 }
  0xad   :  { %1243 = vmatmul.msk.f32.gmra.mxu0 %vm136_vm6, %v111_v58  ;;  %1247 = vmatmul.msk.f32.gmra.mxu1 %vm136_vm6, %v111_v58  ;;  %v1466_v58 = vmov 15   ;;  %vm1160_vm6 = vcmask 15360  }
  0xae   :  { %299 = vmatpush.msra.mxu2 %v258_v37  ;;  %328 = vmatpush.msra.mxu3 %v274_v38 }
  0xaf   :  { %v1754_v29 = vpop.permute.xlu1 %382  ;;  %1383 = vset.pattern.permute.xlu0 %v1466_v58 }
  0xb0   :  { %300 = vmatpush.msra.mxu2 %v257_v39  ;;  %329 = vmatpush.msra.mxu3 %v273_v40 }
  0xb1   :  { %946 = vperm.xlu0 %1383, %v1571_v7  }
  0xb2   :  { %1367 = vset.pattern.permute.xlu1 %v1460_v61  ;;  %301 = vmatpush.msra.mxu2 %v256_v42 }
  0xb3   :  { %658 = vperm.xlu1 %1367, %v1598_v14   ;;  %330 = vmatpush.msra.mxu3 %v272_v43  ;;  %v1843_v38 = vpop.permute.xlu2 %506 }
  0xb4   :  { %698 = vperm.xlu2 %1368, %v1598_v14   ;;  %302 = vmatpush.msra.mxu2 %v255_v44 }
  0xb5   :  { %331 = vmatpush.msra.mxu3 %v271_v45 }
  0xb7   :  { %v1791_v41 = vpop.permute.xlu1 %390 }
  0xb9   :  { %1384 = vset.pattern.permute.xlu0 %v1445_v3 }
  0xba   :  { %356 = vperm.xlu0 %1384, %v1577_v8  }
  0xbb   :  { %1370 = vset.pattern.permute.xlu1 %v1461_v5 }
  0xbc   :  { %790 = vperm.xlu1 %1370, %v1584_v10   ;;  %1372 = vset.pattern.permute.xlu2 %v1461_v5 }
  0xbd   :  { %786 = vperm.xlu2 %1372, %v1571_v7  }
  0xc0   :  { %v1810_v48 = vpop.permute.xlu1 %422 }
  0xc4   :  { %1371 = vset.pattern.permute.xlu1 %v1462_v19 }
  0xc5   :  { %742 = vperm.xlu1 %1371, %v1577_v8   ;;  %782 = vperm.xlu2 %1372, %v1577_v8  }
  0xc8   :  { %v1818_v55 = vpop.permute.xlu1 %430 }
  0xcd   :  { %738 = vperm.xlu1 %1371, %v1598_v14   ;;  %1375 = vset.pattern.permute.xlu2 %v1465_v47 }
  0xce   :  { %870 = vperm.xlu2 %1375, %v1584_v10  }
  0xd1   :  { %v1830_v4 = vpop.permute.xlu1 %470 }
  0xd5   :  { %1374 = vset.pattern.permute.xlu1 %v1463_v22 }
  0xd6   :  { %826 = vperm.xlu1 %1374, %v1571_v7   ;;  %866 = vperm.xlu2 %1375, %v1571_v7  }
  0xd9   :  { %v1841_v32 = vpop.permute.xlu1 %462 }
  0xde   :  { %822 = vperm.xlu1 %1374, %v1577_v8   ;;  %1378 = vset.pattern.permute.xlu2 %v1463_v22 }
  0xdf   :  { %818 = vperm.xlu2 %1378, %v1598_v14  }
  0xe6   :  { %1377 = vset.pattern.permute.xlu1 %v1464_v26 }
  0xe7   :  { %910 = vperm.xlu1 %1377, %v1584_v10   ;;  %1380 = vset.pattern.permute.xlu2 %v1466_v58 }
  0xe8   :  { %950 = vperm.xlu2 %1380, %v1584_v10  }
  0xef   :  { %906 = vperm.xlu1 %1377, %v1571_v7  }
  0xf0   :  { %1382 = vset.pattern.permute.xlu2 %v1464_v26 }
  0xf1   :  { %902 = vperm.xlu2 %1382, %v1577_v8  }
  0xf7   :  { %1381 = vset.pattern.permute.xlu1 %v1465_v47 }
  0xf8   :  { %858 = vperm.xlu1 %1381, %v1598_v14  }
  0xf9   :  { %1386 = vset.pattern.permute.xlu2 %v1466_v58 }
  0xfa   :  { %942 = vperm.xlu2 %1386, %v1577_v8  }
 0x100   :  { %1385 = vset.pattern.permute.xlu1 %v1464_v26 }
 0x101   :  { %898 = vperm.xlu1 %1385, %v1598_v14  }
 0x102   :  { %1388 = vset.pattern.permute.xlu2 %v1445_v3 }
 0x109   :  { %1387 = vset.pattern.permute.xlu1 %v1466_v58 }
 0x10a   :  { %938 = vperm.xlu1 %1387, %v1598_v14  }
 0x112   :  { %v166_v51 = vpop.f32.mrf.mxu0  ;;  %v195_v52 = vpop.f32.mrf.mxu1  ;;  %1389 = vset.pattern.permute.xlu1 %v1445_v3 }
 0x113   :  { %v167_v53 = vadd.f32 %v166_v51, %v119_v50  ;;  %v196_v54 = vadd.f32 %v195_v52, %v119_v50 }
 0x115   :  { %v215_v56 = vmin.f32 %v167_v53, 0.0  ;;  %v216_v57 = vmin.f32 %v196_v54, 0.0  ;;  %vm207_vm7 = vcmp.gt.f32.partialorder %v167_v53, 0.0  ;;  %vm208_vm8 = vcmp.gt.f32.partialorder %v196_v54, 0.0 }
 0x117   :  { %v223_v60 = vmul.f32 1.442695, %v215_v56  ;;  %v225_v61 = vmul.f32 1.442695, %v216_v57  ;;  %v459_v56 = vpop.permute.xlu2 %458 }
 0x119   :  { %1391 = vpow2.f32 %v223_v60 }
 0x11a   :  { %1393 = vpow2.f32 %v225_v61  ;;  %v169_v62 = vpop.f32.mrf.mxu0  ;;  %v198_v63 = vpop.f32.mrf.mxu1 }
 0x11b   :  { %v170_v0 = vadd.f32 %v169_v62, %v1726_v21  ;;  %v199_v1 = vadd.f32 %v198_v63, %v1726_v21 }
 0x11d   :  { %v217_v2 = vmin.f32 %v170_v0, 0.0  ;;  %v218_v7 = vmin.f32 %v199_v1, 0.0  ;;  %vm209_vm9 = vcmp.gt.f32.partialorder %v170_v0, 0.0  ;;  %vm210_vm10 = vcmp.gt.f32.partialorder %v199_v1, 0.0 }
 0x11f   :  { %v1392_v5 = vpop.eup %1391  ;;  %v227_v6 = vmul.f32 1.442695, %v217_v2  ;;  %v229_v9 = vmul.f32 1.442695, %v218_v7 }
 0x120   :  { %v1394_v11 = vpop.eup %1393  ;;  %v1248_v12 = vadd.f32 -1.0, %v1392_v5  ;;  %v379_v5 = vpop.permute.xlu0 %378 }
 0x121   :  { %1395 = vpow2.f32 %v227_v6  ;;  %v1249_v14 = vadd.f32 -1.0, %v1394_v11 }
 0x122   :  { %1397 = vpow2.f32 %v229_v9  ;;  %v172_v15 = vpop.f32.mrf.mxu0  ;;  %v201_v16 = vpop.f32.mrf.mxu1  ;;  %v247_v17 = vsel %vm207_vm7, %v167_v53, %v1248_v12  ;;  %vm1165_vm7 = vcmask 23552  }
 0x123   :  { %v173_v18 = vadd.f32 %v172_v15, %v1743_v25  ;;  %v202_v19 = vadd.f32 %v201_v16, %v1743_v25  ;;  %303 = vmatmul.f32.vlgmr.msra.gmra.mxu2 %v247_v17  ;;  %v248_v20 = vsel %vm208_vm8, %v196_v54, %v1249_v14  ;;  %v1849_v53 = vpop.permute.xlu1 %550  ;;  %vm1198_vm8 = vcmask 25600  }
 0x124   :  { %332 = vmatmul.f32.vlgmr.msra.gmra.mxu3 %v248_v20 }
 0x125   :  { %v219_v21 = vmin.f32 %v173_v18, 0.0  ;;  %v220_v22 = vmin.f32 %v202_v19, 0.0  ;;  %vm211_vm11 = vcmp.gt.f32.partialorder %v173_v18, 0.0  ;;  %vm212_vm12 = vcmp.gt.f32.partialorder %v202_v19, 0.0 }
 0x127   :  { %v1396_v27 = vpop.eup %1395  ;;  %v231_v28 = vmul.f32 1.442695, %v219_v21  ;;  %v233_v30 = vmul.f32 1.442695, %v220_v22 }
 0x128   :  { %v1398_v31 = vpop.eup %1397  ;;  %v1250_v33 = vadd.f32 -1.0, %v1396_v27  ;;  %v419_v11 = vpop.permute.xlu0 %418 }
 0x129   :  { %1399 = vpow2.f32 %v231_v28  ;;  %v1251_v35 = vadd.f32 -1.0, %v1398_v31 }
 0x12a   :  { %1401 = vpow2.f32 %v233_v30  ;;  %v175_v25 = vpop.f32.mrf.mxu0  ;;  %v204_v36 = vpop.f32.mrf.mxu1  ;;  %v249_v37 = vsel %vm209_vm9, %v170_v0, %v1250_v33 }
 0x12b   :  { %v176_v39 = vadd.f32 %v175_v25, %v1733_v23  ;;  %v205_v10 = vadd.f32 %v204_v36, %v1733_v23  ;;  %306 = vmatmul.f32.gmra.mxu2 %v249_v37  ;;  %v250_v40 = vsel %vm210_vm10, %v199_v1, %v1251_v35  ;;  %v1853_v0 = vpop.permute.xlu1 %546  ;;  %v1855_v1 = vpop.permute.xlu2 %590 }
 0x12c   :  { %335 = vmatmul.f32.gmra.mxu3 %v250_v40 }
 0x12d   :  { %v221_v42 = vmin.f32 %v176_v39, 0.0  ;;  %v222_v43 = vmin.f32 %v205_v10, 0.0  ;;  %vm213_vm13 = vcmp.gt.f32.partialorder %v176_v39, 0.0  ;;  %vm214_vm14 = vcmp.gt.f32.partialorder %v205_v10, 0.0 }
 0x12f   :  { %v1400_v44 = vpop.eup %1399  ;;  %v235_v45 = vmul.f32 1.442695, %v221_v42  ;;  %v237_v47 = vmul.f32 1.442695, %v222_v43 }
 0x130   :  { %v1402_v50 = vpop.eup %1401  ;;  %v1252_v51 = vadd.f32 -1.0, %v1400_v44  ;;  %v1872_v15 = vpop.permute.xlu0 %510 }
 0x131   :  { %1403 = vpow2.f32 %v235_v45  ;;  %v1253_v52 = vadd.f32 -1.0, %v1402_v50 }
 0x132   :  { %1405 = vpow2.f32 %v237_v47  ;;  %v251_v23 = vsel %vm211_vm11, %v173_v18, %v1252_v51 }
 0x133   :  { %309 = vmatmul.f32.gmra.mxu2 %v251_v23  ;;  %v252_v54 = vsel %vm212_vm12, %v202_v19, %v1253_v52  ;;  %v1858_v2 = vpop.permute.xlu1 %542  ;;  %v1860_v58 = vpop.permute.xlu2 %586 }
 0x134   :  { %338 = vmatmul.f32.gmra.mxu3 %v252_v54 }
 0x137   :  { %v1404_v26 = vpop.eup %1403 }
 0x138   :  { %v1406_v57 = vpop.eup %1405  ;;  %v1254_v60 = vadd.f32 -1.0, %v1404_v26  ;;  %v1876_v17 = vpop.permute.xlu0 %502 }
 0x139   :  { %v1255_v61 = vadd.f32 -1.0, %v1406_v57 }
 0x13a   :  { %v253_v62 = vsel %vm213_vm13, %v176_v39, %v1254_v60 }
 0x13b   :  { %312 = vmatmul.f32.gmra.mxu2 %v253_v62  ;;  %v254_v63 = vsel %vm214_vm14, %v205_v10, %v1255_v61  ;;  %v539_v8 = vpop.permute.xlu1 %538  ;;  %v1862_v7 = vpop.permute.xlu2 %582 }
 0x13c   :  { %341 = vmatmul.f32.gmra.mxu3 %v254_v63 }
 0x140   :  { %v499_v20 = vpop.permute.xlu0 %498 }
 0x143   :  { %v1864_v6 = vpop.permute.xlu1 %626  ;;  %v1866_v9 = vpop.permute.xlu2 %670 }
 0x148   :  { %v1884_v27 = vpop.permute.xlu0 %630 }
 0x14b   :  { %v1868_v12 = vpop.permute.xlu1 %622  ;;  %v1870_v14 = vpop.permute.xlu2 %666 }
 0x150   :  { %v579_v31 = vpop.permute.xlu0 %578 }
 0x153   :  { %v1874_v3 = vpop.permute.xlu1 %710  ;;  %v619_v16 = vpop.permute.xlu2 %618 }
 0x158   :  { %v1892_v25 = vpop.permute.xlu0 %662 }
 0x15b   :  { %v1878_v18 = vpop.permute.xlu1 %706  ;;  %v1880_v19 = vpop.permute.xlu2 %750 }
 0x160   :  { %v1896_v39 = vpop.permute.xlu0 %746 }
 0x163   :  { %v659_v21 = vpop.permute.xlu1 %658  ;;  %v1882_v22 = vpop.permute.xlu2 %702 }
 0x168   :  { %v1910_v51 = vpop.permute.xlu0 %830 }
 0x16b   :  { %v1886_v28 = vpop.permute.xlu1 %790  ;;  %v699_v30 = vpop.permute.xlu2 %698 }
 0x170   :  { %v779_v57 = vpop.permute.xlu0 %778 }
 0x173   :  { %v1888_v33 = vpop.permute.xlu1 %742  ;;  %v1890_v35 = vpop.permute.xlu2 %786 }
 0x17b   :  { %v739_v36 = vpop.permute.xlu1 %738  ;;  %v1894_v37 = vpop.permute.xlu2 %782 }
 0x183   :  { %v1900_v43 = vpop.permute.xlu1 %826  ;;  %v1907_v50 = vpop.permute.xlu2 %870 }
 0x18b   :  { %v823_v26 = vpop.permute.xlu1 %822 }
 0x1a6   :  { %v304_v10 = vpop.f32.mrf.mxu2 }
 0x1a7   :  { %v333_v40 = vpop.f32.mrf.mxu3 }
 0x1a8   :  { %v1898_v42 = vadd.f32 %v333_v40, %v304_v10 }
 0x1aa   :  { %v553_v44 = vmul.f32 %v539_v8, %v1898_v42  ;;  %v473_v45 = vmul.f32 %v459_v56, %v1898_v42  ;;  %v393_v47 = vmul.f32 %v379_v5, %v1898_v42  ;;  %v673_v52 = vmul.f32 %v659_v21, %v1898_v42  ;;  %v1918_v56 = vpop.permute.xlu2 %866  ;;  %v1926_v5 = vpop.permute.xlu1 %910 }
 0x1ab   :  { %v593_v23 = vmul.f32 %v579_v31, %v1898_v42  ;;  %v433_v54 = vmul.f32 %v419_v11, %v1898_v42  ;;  %v793_v60 = vmul.f32 %v779_v57, %v1898_v42  ;;  %v713_v61 = vmul.f32 %v699_v30, %v1898_v42 }
 0x1ac   :  { %561 = vrot.lane.b32.xlu0 %v553_v44, %s1446_s17  ;;  %481 = vrot.lane.b32.xlu1 %v473_v45, %s1449_s22  ;;  %v513_v8 = vmul.f32 %v499_v20, %v1898_v42  ;;  %v633_v20 = vmul.f32 %v619_v16, %v1898_v42 }
 0x1ad   :  { %401 = vrot.lane.b32.xlu2 %v393_v47, %s1451_s24 }
 0x1ae   :  { %v307_v62 = vpop.f32.mrf.mxu2 }
 0x1af   :  { %v336_v63 = vpop.f32.mrf.mxu3 }
 0x1b0   :  { %v1928_v11 = vadd.f32 %v336_v63, %v307_v62 }
 0x1b2   :  { %v819_v21 = vpop.permute.xlu2 %818  ;;  %v394_v30 = vmul.f32 %v1754_v29, %v1928_v11  ;;  %v1937_v10 = vpop.permute.xlu1 %906  ;;  %v474_v40 = vmul.f32 %v1841_v32, %v1928_v11  ;;  %v434_v44 = vmul.f32 %v1810_v48, %v1928_v11  ;;  %v753_v29 = vmul.f32 %v739_v36, %v1898_v42 }
 0x1b3   :  { %v833_v31 = vmul.f32 %v819_v21, %v1898_v42  ;;  %v594_v45 = vmul.f32 %v1862_v7, %v1928_v11  ;;  %v554_v47 = vmul.f32 %v1858_v2, %v1928_v11  ;;  %v714_v48 = vmul.f32 %v1882_v22, %v1928_v11 }
 0x1b4   :  { %681 = vrot.lane.b32.xlu0 %v673_v52, %s1467_s3  ;;  %601 = vrot.lane.b32.xlu1 %v593_v23, %s1447_s18  ;;  %v674_v36 = vmul.f32 %v1892_v25, %v1928_v11  ;;  %v514_v7 = vmul.f32 %v1876_v17, %v1928_v11  ;;  %v834_v52 = vmul.f32 %v823_v26, %v1928_v11 }
 0x1b5   :  { %441 = vrot.lane.b32.xlu2 %v433_v54, %s1450_s23  ;;  %v794_v23 = vmul.f32 %v1894_v37, %v1928_v11  ;;  %v634_v25 = vmul.f32 %v1868_v12, %v1928_v11  ;;  %v754_v37 = vmul.f32 %v1888_v33, %v1928_v11  ;;  %v863_v12 = vpop.permute.xlu0 %862 }
 0x1b6   :  { %v310_v22 = vpop.f32.mrf.mxu2  ;;  %v874_v63 = vmul.f32 %v863_v12, %v1928_v11 }
 0x1b7   :  { %v339_v54 = vpop.f32.mrf.mxu3 }
 0x1b8   :  { %v1974_v17 = vadd.f32 %v339_v54, %v310_v22 }
 0x1ba   :  { %v859_v16 = vpop.permute.xlu1 %858  ;;  %v1964_v2 = vpop.permute.xlu2 %950  ;;  %v395_v26 = vmul.f32 %v1813_v49, %v1974_v17  ;;  %v595_v62 = vmul.f32 %v1860_v58, %v1974_v17  ;;  %v555_v49 = vmul.f32 %v1853_v0, %v1974_v17  ;;  %v715_v33 = vmul.f32 %v1878_v18, %v1974_v17 }
 0x1bb   :  { %v873_v32 = vmul.f32 %v859_v16, %v1898_v42  ;;  %v835_v0 = vmul.f32 %v1900_v43, %v1974_v17  ;;  %v515_v18 = vmul.f32 %v1843_v38, %v1974_v17  ;;  %v635_v38 = vmul.f32 %v1864_v6, %v1974_v17 }
 0x1bc   :  { %801 = vrot.lane.b32.xlu0 %v793_v60, %s1468_s2  ;;  %721 = vrot.lane.b32.xlu1 %v713_v61, %s1469_s0  ;;  %v435_v61 = vmul.f32 %v1823_v59, %v1974_v17  ;;  %v475_v59 = vmul.f32 %v1835_v13, %v1974_v17  ;;  %v369_v13 = vmul.f32 %v1769_v34, %v1898_v42 }
 0x1bd   :  { %521 = vrot.lane.b32.xlu2 %v513_v8, %s1448_s19  ;;  %v675_v8 = vmul.f32 %v1870_v14, %v1974_v17  ;;  %v795_v14 = vmul.f32 %v1890_v35, %v1974_v17  ;;  %v915_v16 = vmul.f32 %v1937_v10, %v1974_v17  ;;  %v755_v6 = vmul.f32 %v1896_v39, %v1974_v17 }
 0x1c2   :  { %v903_v57 = vpop.permute.xlu2 %902 }
 0x1c3   :  { %v914_v60 = vmul.f32 %v903_v57, %v1928_v11 }
 0x1c4   :  { %841 = vrot.lane.b32.xlu1 %v833_v31, %s1470_s25  ;;  %403 = vrot.lane.b32.xlu0 %v394_v30, %s1451_s24  ;;  %v947_v30 = vpop.permute.xlu0 %946 }
 0x1c5   :  { %641 = vrot.lane.b32.xlu2 %v633_v20, %s1471_s26  ;;  %v955_v43 = vmul.f32 %v947_v30, %v1974_v17  ;;  %v313_v20 = vpop.f32.mrf.mxu2 }
 0x1ca   :  { %v2001_v58 = vpop.permute.xlu2 %942 }
 0x1cc   :  { %483 = vrot.lane.b32.xlu1 %v474_v40, %s1449_s22  ;;  %443 = vrot.lane.b32.xlu0 %v434_v44, %s1450_s23  ;;  %v342_v40 = vpop.f32.mrf.mxu3  ;;  %v2019_v44 = vpop.permute.xlu1 %898 }
 0x1cd   :  { %761 = vrot.lane.b32.xlu2 %v753_v29, %s1472_s27  ;;  %v2024_v34 = vadd.f32 %v342_v40, %v313_v20 }
 0x1cf   :  { %v596_v10 = vmul.f32 %v1855_v1, %v2024_v34  ;;  %v716_v1 = vmul.f32 %v1874_v3, %v2024_v34  ;;  %v836_v3 = vmul.f32 %v1910_v51, %v2024_v34  ;;  %v956_v51 = vmul.f32 %v1964_v2, %v2024_v34 }
 0x1d0   :  { %v756_v30 = vmul.f32 %v1880_v19, %v2024_v34 }
 0x1d4   :  { %603 = vrot.lane.b32.xlu1 %v594_v45, %s1447_s18  ;;  %563 = vrot.lane.b32.xlu0 %v554_v47, %s1446_s17  ;;  %v476_v45 = vmul.f32 %v1830_v4, %v2024_v34  ;;  %v939_v47 = vpop.permute.xlu1 %938  ;;  %v875_v4 = vmul.f32 %v1918_v56, %v1974_v17  ;;  %v396_v56 = vmul.f32 %v1791_v41, %v2024_v34 }
 0x1d5   :  { %881 = vrot.lane.b32.xlu2 %v873_v32, %s1473_s28  ;;  %v357_v32 = vpop.permute.xlu0 %356  ;;  %v436_v41 = vmul.f32 %v1818_v55, %v2024_v34  ;;  %v636_v55 = vmul.f32 %v1884_v27, %v2024_v34  ;;  %v953_v2 = vmul.f32 %v939_v47, %v1898_v42  ;;  %v916_v27 = vmul.f32 %v1926_v5, %v2024_v34 }
 0x1d6   :  { %v876_v5 = vmul.f32 %v1907_v50, %v2024_v34 }
 0x1dc   :  { %723 = vrot.lane.b32.xlu1 %v714_v48, %s1469_s0  ;;  %683 = vrot.lane.b32.xlu0 %v674_v36, %s1467_s3  ;;  %v516_v36 = vmul.f32 %v1872_v15, %v2024_v34  ;;  %v556_v15 = vmul.f32 %v1849_v53, %v2024_v34  ;;  %v676_v53 = vmul.f32 %v1866_v9, %v2024_v34 }
 0x1dd   :  { %523 = vrot.lane.b32.xlu2 %v514_v7, %s1448_s19  ;;  %v796_v9 = vmul.f32 %v1886_v28, %v2024_v34 }
 0x1e4   :  { %843 = vrot.lane.b32.xlu1 %v834_v52, %s1470_s25  ;;  %803 = vrot.lane.b32.xlu0 %v794_v23, %s1468_s2 }
 0x1e5   :  { %643 = vrot.lane.b32.xlu2 %v634_v25, %s1471_s26 }
 0x1ec   :  { %923 = vrot.lane.b32.xlu0 %v914_v60, %s1474_s29  ;;  %405 = vrot.lane.b32.xlu1 %v395_v26, %s1451_s24 }
 0x1ed   :  { %763 = vrot.lane.b32.xlu2 %v754_v37, %s1472_s27 }
 0x1f4   :  { %445 = vrot.lane.b32.xlu0 %v435_v61, %s1450_s23  ;;  %605 = vrot.lane.b32.xlu1 %v595_v62, %s1447_s18 }
 0x1f5   :  { %883 = vrot.lane.b32.xlu2 %v874_v63, %s1473_s28 }
 0x1fc   :  { %565 = vrot.lane.b32.xlu0 %v555_v49, %s1446_s17  ;;  %725 = vrot.lane.b32.xlu1 %v715_v33, %s1469_s0 }
 0x1fd   :  { %485 = vrot.lane.b32.xlu2 %v475_v59, %s1449_s22 }
 0x204   :  { %685 = vrot.lane.b32.xlu0 %v675_v8, %s1467_s3  ;;  %845 = vrot.lane.b32.xlu1 %v835_v0, %s1470_s25  ;;  %v370_v8 = vmul.f32 %v357_v32, %v1928_v11  ;;  %v983_v32 = vld [vmem:[%s2228_s6 + $0x10] sm:$0xff] }
 0x205   :  { %525 = vrot.lane.b32.xlu2 %v515_v18, %s1448_s19 }
 0x207   :  { %v402_v21 = vpop.permute.xlu2 %401 }
 0x208   :  { %v413_v31 = vadd.f32 %v402_v21, %v369_v13 }
 0x20c   :  { %805 = vrot.lane.b32.xlu0 %v795_v14, %s1468_s2  ;;  %965 = vrot.lane.b32.xlu1 %v955_v43, %s1475_s30 }
 0x20d   :  { %645 = vrot.lane.b32.xlu2 %v635_v38, %s1471_s26 }
 0x20f   :  { %v442_v29 = vpop.permute.xlu2 %441 }
 0x210   :  { %v453_v35 = vadd.f32 %v442_v29, %v413_v31  ;;  %v954_v29 = vmul.f32 %v2001_v58, %v1928_v11  ;;  %v913_v11 = vmul.f32 %v2019_v44, %v1898_v42 }
 0x214   :  { %925 = vrot.lane.b32.xlu0 %v915_v16, %s1474_s29  ;;  %487 = vrot.lane.b32.xlu1 %v476_v45, %s1449_s22 }
 0x215   :  { %765 = vrot.lane.b32.xlu2 %v755_v6, %s1472_s27 }
 0x217   :  { %v522_v48 = vpop.permute.xlu2 %521 }
 0x21c   :  { %527 = vrot.lane.b32.xlu0 %v516_v36, %s1448_s19  ;;  %607 = vrot.lane.b32.xlu1 %v596_v10, %s1447_s18 }
 0x21d   :  { %885 = vrot.lane.b32.xlu2 %v875_v4, %s1473_s28 }
 0x21e   :  { %v562_v39 = vpop.permute.xlu0 %561  ;;  %v482_v7 = vpop.permute.xlu1 %481 }
 0x21f   :  { %v493_v52 = vadd.f32 %v482_v7, %v453_v35  ;;  %v642_v23 = vpop.permute.xlu2 %641 }
 0x221   :  { %v533_v22 = vadd.f32 %v522_v48, %v493_v52 }
 0x223   :  { %v573_v54 = vadd.f32 %v562_v39, %v533_v22 }
 0x224   :  { %567 = vrot.lane.b32.xlu0 %v556_v15, %s1446_s17  ;;  %727 = vrot.lane.b32.xlu1 %v716_v1, %s1469_s0 }
 0x225   :  { %407 = vrot.lane.b32.xlu2 %v396_v56, %s1451_s24 }
 0x226   :  { %v682_v25 = vpop.permute.xlu0 %681  ;;  %v602_v57 = vpop.permute.xlu1 %601 }
 0x227   :  { %v613_v60 = vadd.f32 %v602_v57, %v573_v54  ;;  %v762_v26 = vpop.permute.xlu2 %761 }
 0x229   :  { %v653_v37 = vadd.f32 %v642_v23, %v613_v60 }
 0x22b   :  { %v693_v12 = vadd.f32 %v682_v25, %v653_v37 }
 0x22c   :  { %687 = vrot.lane.b32.xlu0 %v676_v53, %s1467_s3  ;;  %847 = vrot.lane.b32.xlu1 %v836_v3, %s1470_s25 }
 0x22d   :  { %447 = vrot.lane.b32.xlu2 %v436_v41, %s1450_s23 }
 0x22e   :  { %v802_v61 = vpop.permute.xlu0 %801  ;;  %v722_v62 = vpop.permute.xlu1 %721 }
 0x22f   :  { %v733_v63 = vadd.f32 %v722_v62, %v693_v12  ;;  %v882_v49 = vpop.permute.xlu2 %881 }
 0x231   :  { %v773_v33 = vadd.f32 %v762_v26, %v733_v63 }
 0x233   :  { %v813_v59 = vadd.f32 %v802_v61, %v773_v33 }
 0x234   :  { %807 = vrot.lane.b32.xlu0 %v796_v9, %s1468_s2  ;;  %967 = vrot.lane.b32.xlu1 %v956_v51, %s1475_s30 }
 0x235   :  { %647 = vrot.lane.b32.xlu2 %v636_v55, %s1471_s26 }
 0x236   :  { %v842_v0 = vpop.permute.xlu1 %841  ;;  %v404_v18 = vpop.permute.xlu0 %403 }
 0x237   :  { %v853_v13 = vadd.f32 %v842_v0, %v813_v59  ;;  %v524_v21 = vpop.permute.xlu2 %523  ;;  %v414_v28 = vadd.f32 %v404_v18, %v370_v8  ;;  %v372_v8 = vmul.f32 %v1806_v46, %v2024_v34 }
 0x239   :  { %v2072_v31 = vadd.f32 %v882_v49, %v853_v13  ;;  %v371_v49 = vmul.f32 %v1741_v24, %v1974_v17 }
 0x23c   :  { %927 = vrot.lane.b32.xlu0 %v916_v27, %s1474_s29  ;;  %961 = vrot.lane.b32.xlu1 %v953_v2, %s1475_s30 }
 0x23d   :  { %767 = vrot.lane.b32.xlu2 %v756_v30, %s1472_s27 }
 0x23e   :  { %v484_v14 = vpop.permute.xlu1 %483  ;;  %v444_v43 = vpop.permute.xlu0 %443 }
 0x23f   :  { %v644_v20 = vpop.permute.xlu2 %643  ;;  %v454_v40 = vadd.f32 %v444_v43, %v414_v28 }
 0x241   :  { %v494_v38 = vadd.f32 %v484_v14, %v454_v40 }
 0x243   :  { %v534_v35 = vadd.f32 %v524_v21, %v494_v38 }
 0x244   :  { %963 = vrot.lane.b32.xlu0 %v954_v29, %s1475_s30  ;;  %s1231_s30 = sshll.u32 %s2232_s10, 4  ;;  %s1232_s30 = int_to_ptr.hbm [resolvable:$true] %s1231_s30 }
 0x245   :  { %887 = vrot.lane.b32.xlu2 %v876_v5, %s1473_s28 }
 0x246   :  { %v604_v19 = vpop.permute.xlu1 %603  ;;  %v564_v16 = vpop.permute.xlu0 %563 }
 0x247   :  { %v764_v45 = vpop.permute.xlu2 %763  ;;  %v574_v6 = vadd.f32 %v564_v16, %v534_v35 }
 0x249   :  { %v614_v47 = vadd.f32 %v604_v19, %v574_v6 }
 0x24b   :  { %v654_v58 = vadd.f32 %v644_v20, %v614_v47 }
 0x24c   :  { %997 = vperm.xlu0 %1384, %v983_v32  }
 0x24d   :  { %921 = vrot.lane.b32.xlu2 %v913_v11, %s1474_s29 }
 0x24e   :  { %v724_v50 = vpop.permute.xlu1 %723  ;;  %v684_v48 = vpop.permute.xlu0 %683 }
 0x24f   :  { %v884_v36 = vpop.permute.xlu2 %883  ;;  %v694_v10 = vadd.f32 %v684_v48, %v654_v58 }
 0x251   :  { %v734_v4 = vadd.f32 %v724_v50, %v694_v10 }
 0x253   :  { %v774_v39 = vadd.f32 %v764_v45, %v734_v4 }
 0x256   :  { %v844_v7 = vpop.permute.xlu1 %843  ;;  %v804_v52 = vpop.permute.xlu0 %803 }
 0x257   :  { %v814_v23 = vadd.f32 %v804_v52, %v774_v39  ;;  %v486_v22 = vpop.permute.xlu2 %485  ;;  %v982_v39 = vld [vmem:[%s2228_s6 + $0x8] sm:$0xff] }
 0x258   :  { %992 = vperm.xlu1 %1389, %v982_v39  }
 0x259   :  { %v854_v15 = vadd.f32 %v844_v7, %v814_v23  ;;  %v984_v7 = vld [vmem:[%s2228_s6 + $0x18] sm:$0xff] }
 0x25a   :  { %1002 = vperm.xlu2 %1388, %v984_v7  }
 0x25b   :  { %v894_v1 = vadd.f32 %v884_v36, %v854_v15 }
 0x25e   :  { %v924_v56 = vpop.permute.xlu0 %923  ;;  %v406_v54 = vpop.permute.xlu1 %405 }
 0x25f   :  { %v2094_v25 = vadd.f32 %v924_v56, %v894_v1  ;;  %v526_v42 = vpop.permute.xlu2 %525  ;;  %v415_v33 = vadd.f32 %v406_v54, %v371_v49 }
 0x266   :  { %v446_v44 = vpop.permute.xlu0 %445  ;;  %v606_v57 = vpop.permute.xlu1 %605 }
 0x267   :  { %v646_v60 = vpop.permute.xlu2 %645  ;;  %v455_v55 = vadd.f32 %v446_v44, %v415_v33 }
 0x269   :  { %v495_v59 = vadd.f32 %v486_v22, %v455_v55 }
 0x26b   :  { %v535_v28 = vadd.f32 %v526_v42, %v495_v59  ;;  %v981_v42 = vld [vmem:[%s2228_s6] sm:$0xff] }
 0x26c   :  { %987 = vperm.xlu2 %1388, %v981_v42  }
 0x26e   :  { %v566_v26 = vpop.permute.xlu0 %565  ;;  %v726_v37 = vpop.permute.xlu1 %725 }
 0x26f   :  { %v766_v53 = vpop.permute.xlu2 %765  ;;  %v575_v27 = vadd.f32 %v566_v26, %v535_v28 }
 0x271   :  { %v615_v14 = vadd.f32 %v606_v57, %v575_v27 }
 0x273   :  { %v655_v38 = vadd.f32 %v646_v60, %v615_v14  ;;  %v1267_v14 = vld [vmem:[%s2229_s7 + $0x38] sm:$0xff] }
 0x276   :  { %v686_v3 = vpop.permute.xlu0 %685  ;;  %v846_v41 = vpop.permute.xlu1 %845 }
 0x277   :  { %v886_v12 = vpop.permute.xlu2 %885  ;;  %v695_v5 = vadd.f32 %v686_v3, %v655_v38  ;;  %v977_v3 = vld [vmem:[%s2227_s5] sm:$0xff] }
 0x279   :  { %v735_v46 = vadd.f32 %v726_v37, %v695_v5 }
 0x27b   :  { %v775_v47 = vadd.f32 %v766_v53, %v735_v46 }
 0x27e   :  { %v806_v61 = vpop.permute.xlu0 %805  ;;  %v966_v62 = vpop.permute.xlu1 %965 }
 0x27f   :  { %v408_v63 = vpop.permute.xlu2 %407  ;;  %v815_v32 = vadd.f32 %v806_v61, %v775_v47  ;;  %v1264_v47 = vld [vmem:[%s2229_s7 + $0x20] sm:$0xff] }
 0x280   :  { %v416_v18 = vadd.f32 %v408_v63, %v372_v8 }
 0x281   :  { %v855_v48 = vadd.f32 %v846_v41, %v815_v32  ;;  %v980_v41 = vld [vmem:[%s2227_s5 + $0x18] sm:$0xff] }
 0x283   :  { %v895_v52 = vadd.f32 %v886_v12, %v855_v48 }
 0x286   :  { %v926_v9 = vpop.permute.xlu0 %925  ;;  %v488_v51 = vpop.permute.xlu1 %487 }
 0x287   :  { %v448_v0 = vpop.permute.xlu2 %447  ;;  %v935_v15 = vadd.f32 %v926_v9, %v895_v52 }
 0x288   :  { %v456_v2 = vadd.f32 %v448_v0, %v416_v18 }
 0x289   :  { %v975_v54 = vadd.f32 %v966_v62, %v935_v15  ;;  %v1269_v15 = vld [vmem:[%s2229_s7 + $0x48] sm:$0xff] }
 0x28a   :  { %v496_v30 = vadd.f32 %v488_v51, %v456_v2 }
 0x28e   :  { %v528_v13 = vpop.permute.xlu0 %527  ;;  %v608_v21 = vpop.permute.xlu1 %607 }
 0x28f   :  { %v536_v43 = vadd.f32 %v528_v13, %v496_v30  ;;  %v648_v20 = vpop.permute.xlu2 %647  ;;  %v1271_v30 = vld [vmem:[%s2229_s7 + $0x58] sm:$0xff] }
 0x296   :  { %v568_v24 = vpop.permute.xlu0 %567  ;;  %v728_v40 = vpop.permute.xlu1 %727 }
 0x297   :  { %v576_v17 = vadd.f32 %v568_v24, %v536_v43  ;;  %v768_v16 = vpop.permute.xlu2 %767  ;;  %v1074_v43 = vld [vmem:[%s2229_s7 + $0x18] sm:$0xff] }
 0x299   :  { %v616_v29 = vadd.f32 %v608_v21, %v576_v17 }
 0x29b   :  { %v656_v35 = vadd.f32 %v648_v20, %v616_v29 }
 0x29e   :  { %v688_v19 = vpop.permute.xlu0 %687  ;;  %v848_v6 = vpop.permute.xlu1 %847 }
 0x29f   :  { %v696_v34 = vadd.f32 %v688_v19, %v656_v35  ;;  %v888_v10 = vpop.permute.xlu2 %887 }
 0x2a1   :  { %v736_v45 = vadd.f32 %v728_v40, %v696_v34 }
 0x2a3   :  { %v776_v11 = vadd.f32 %v768_v16, %v736_v45 }
 0x2a6   :  { %v808_v58 = vpop.permute.xlu0 %807  ;;  %v968_v4 = vpop.permute.xlu1 %967 }
 0x2a7   :  { %v816_v50 = vadd.f32 %v808_v58, %v776_v11  ;;  %v922_v44 = vpop.permute.xlu2 %921 }
 0x2a8   :  { %v933_v26 = vadd.f32 %v922_v44, %v2072_v31  ;;  %v978_v31 = vld [vmem:[%s2227_s5 + $0x8] sm:$0xff] }
 0x2a9   :  { %v856_v36 = vadd.f32 %v848_v6, %v816_v50  ;;  %v1275_v6 = vld [vmem:[%s2229_s7 + $0x78] sm:$0xff]  ;;  %v1072_v50 = vld [vmem:[%s2229_s7 + $0x8] sm:$0xff] }
 0x2ab   :  { %v896_v23 = vadd.f32 %v888_v10, %v856_v36 }
 0x2ae   :  { %v928_v22 = vpop.permute.xlu0 %927  ;;  %v962_v57 = vpop.permute.xlu1 %961 }
 0x2af   :  { %v936_v1 = vadd.f32 %v928_v22, %v896_v23  ;;  %v973_v53 = vadd.f32 %v962_v57, %v933_v26  ;;  %v1071_v23 = vld [vmem:[%s2229_s7] sm:$0xff] }
 0x2b1   :  { %v976_v56 = vadd.f32 %v968_v4, %v936_v1 }
 0x2b3   :  { %1030 = vmatpush.msrb.mxu0 %v976_v56  ;;  %1277 = vmatpush.msrb.mxu1 %v976_v56  ;;  %v1270_v56 = vld [vmem:[%s2229_s7 + $0x50] sm:$0xff] }
 0x2b4   :  { %v1003_v12 = vpop.permute.xlu2 %1002 }
 0x2b5   :  { %1031 = vmatpush.msrb.mxu0 %v975_v54  ;;  %1278 = vmatpush.msrb.mxu1 %v975_v54 }
 0x2b6   :  { %v964_v60 = vpop.permute.xlu0 %963 }
 0x2b7   :  { %v974_v37 = vadd.f32 %v964_v60, %v2094_v25  ;;  %v979_v25 = vld [vmem:[%s2227_s5 + $0x10] sm:$0xff] }
 0x2b9   :  { %1032 = vmatpush.msrb.mxu0 %v974_v37  ;;  %1279 = vmatpush.msrb.mxu1 %v974_v37 }
 0x2bb   :  { %1033 = vmatpush.msrb.mxu0 %v973_v53  ;;  %1280 = vmatpush.msrb.mxu1 %v973_v53  ;;  %v1274_v53 = vld [vmem:[%s2229_s7 + $0x70] sm:$0xff] }
 0x2bc   :  { %1256 = vmatmul.msk.f32.vlgmr.msrb.gmra.mxu0 %vm1005_vm15, %v977_v3  ;;  %1259 = vmatmul.msk.f32.vlgmr.msrb.gmra.mxu1 %vm1005_vm15, %v980_v41  ;;  %v1265_v3 = vld [vmem:[%s2229_s7 + $0x28] sm:$0xff]  ;;  %v1266_v41 = vld [vmem:[%s2229_s7 + $0x30] sm:$0xff] }
 0x2be   :  { %v998_v20 = vpop.permute.xlu0 %997 }
 0x2c4   :  { %1257 = vmatmul.msk.f32.gmra.mxu0 %vm1005_vm15, %v978_v31 }
 0x2c6   :  { %v988_v61 = vpop.permute.xlu2 %987 }
 0x2ca   :  { %v993_v8 = vpop.permute.xlu1 %992 }
 0x2cc   :  { %1258 = vmatmul.msk.f32.gmra.mxu0 %vm1005_vm15, %v979_v25 }
 0x339   :  { %v1035_v62 = vpop.f32.mrf.mxu0  ;;  %v1044_v63 = vpop.f32.mrf.mxu1 }
 0x33a   :  { %v1045_v49 = vadd.f32 %v1044_v63, %v1003_v12  ;;  %v1036_v33 = vadd.f32 %v1035_v62, %v988_v61 }
 0x33c   :  { %v1054_v9 = vmin.f32 %v1045_v49, 0.0  ;;  %v1051_v51 = vmin.f32 %v1036_v33, 0.0  ;;  %vm1050_vm0 = vcmp.gt.f32.partialorder %v1045_v49, 0.0  ;;  %vm1047_vm2 = vcmp.gt.f32.partialorder %v1036_v33, 0.0 }
 0x33e   :  { %v1061_v55 = vmul.f32 1.442695, %v1054_v9  ;;  %v1055_v59 = vmul.f32 1.442695, %v1051_v51  ;;  %v1273_v9 = vld [vmem:[%s2229_s7 + $0x68] sm:$0xff] }
 0x340   :  { %1407 = vpow2.f32 %v1061_v55 }
 0x341   :  { %1409 = vpow2.f32 %v1055_v59  ;;  %v1038_v0 = vpop.f32.mrf.mxu0 }
 0x342   :  { %v1039_v18 = vadd.f32 %v1038_v0, %v993_v8 }
 0x344   :  { %v1052_v13 = vmin.f32 %v1039_v18, 0.0  ;;  %vm1048_vm3 = vcmp.gt.f32.partialorder %v1039_v18, 0.0 }
 0x346   :  { %v1408_v21 = vpop.eup %1407  ;;  %v1057_v28 = vmul.f32 1.442695, %v1052_v13  ;;  %v1268_v13 = vld [vmem:[%s2229_s7 + $0x40] sm:$0xff] }
 0x347   :  { %v1410_v2 = vpop.eup %1409  ;;  %v1263_v27 = vadd.f32 -1.0, %v1408_v21 }
 0x348   :  { %1411 = vpow2.f32 %v1057_v28  ;;  %v1260_v17 = vadd.f32 -1.0, %v1410_v2 }
 0x349   :  { %v1070_v24 = vsel %vm1050_vm0, %v1045_v49, %v1263_v27  ;;  %v1041_v40 = vpop.f32.mrf.mxu0  ;;  %v1272_v49 = vld [vmem:[%s2229_s7 + $0x60] sm:$0xff] }
 0x34a   :  { %v1042_v38 = vadd.f32 %v1041_v40, %v998_v20  ;;  %v1121_v29 = vmul.f32 %v1271_v30, %v1070_v24  ;;  %v1100_v5 = vmul.f32 %v1267_v14, %v1070_v24  ;;  %v1078_v35 = vmul.f32 %v1074_v43, %v1070_v24 }
 0x34b   :  { %v2138_v16 = vsel %vm1047_vm2, %v1036_v33, %v1260_v17  ;;  %v1142_v48 = vmul.f32 %v1275_v6, %v1070_v24  ;;  %v1073_v33 = vld [vmem:[%s2229_s7 + $0x10] sm:$0xff] }
 0x34c   :  { %v1053_v19 = vmin.f32 %v1042_v38, 0.0  ;;  %v1131_v46 = vsel %vm1079_vm1, %v1121_v29, 0.0  ;;  %v1110_v34 = vsel %vm1079_vm1, %v1100_v5, 0.0  ;;  %v1089_v45 = vsel %vm1079_vm1, %v1078_v35, 0.0 }
 0x34d   :  { %1132 = vadd.xlane.f32.xlu0 %v1131_v46  ;;  %1111 = vadd.xlane.f32.xlu2 %v1110_v34  ;;  %v1097_v36 = vmul.f32 %v1264_v47, %v2138_v16  ;;  %v1152_v39 = vsel %vm1079_vm1, %v1142_v48, 0.0  ;;  %vm1049_vm4 = vcmp.gt.f32.partialorder %v1042_v38, 0.0  ;;  %v1075_v54 = vmul.f32 %v1071_v23, %v2138_v16 }
 0x34e   :  { %v1412_v32 = vpop.eup %1411  ;;  %v1059_v11 = vmul.f32 1.442695, %v1053_v19  ;;  %1090 = vadd.xlane.f32.xlu1 %v1089_v45  ;;  %v1139_v51 = vmul.f32 %v1272_v49, %v2138_v16  ;;  %v1118_v21 = vmul.f32 %v1268_v13, %v2138_v16 }
 0x34f   :  { %v1261_v58 = vadd.f32 -1.0, %v1412_v32  ;;  %v1101_v52 = vsel %vm1079_vm1, %v1097_v36, 0.0  ;;  %v1080_v26 = vsel %vm1079_vm1, %v1075_v54, 0.0 }
 0x350   :  { %1413 = vpow2.f32 %v1059_v11  ;;  %v1143_v8 = vsel %vm1079_vm1, %v1139_v51, 0.0  ;;  %v1122_v28 = vsel %vm1079_vm1, %v1118_v21, 0.0 }
 0x351   :  { %v1068_v10 = vsel %vm1048_vm3, %v1039_v18, %v1261_v58 }
 0x352   :  { %v1076_v4 = vmul.f32 %v1072_v50, %v1068_v10  ;;  %v1119_v44 = vmul.f32 %v1269_v15, %v1068_v10  ;;  %v1098_v25 = vmul.f32 %v1265_v3, %v1068_v10  ;;  %v1140_v59 = vmul.f32 %v1273_v9, %v1068_v10 }
 0x354   :  { %v1083_v7 = vsel %vm1079_vm1, %v1076_v4, 0.0  ;;  %v1125_v37 = vsel %vm1079_vm1, %v1119_v44, 0.0  ;;  %v1104_v62 = vsel %vm1079_vm1, %v1098_v25, 0.0  ;;  %v1146_v18 = vsel %vm1079_vm1, %v1140_v59, 0.0  ;;  %v1170_v4 = vld [vmem:[%s2230_s8] sm:$0x3] }
 0x355   :  { %1153 = vadd.xlane.f32.xlu2 %v1152_v39  ;;  %1102 = vadd.xlane.f32.xlu0 %v1101_v52  ;;  %s1476_s8 = smov [#allocation2]  }
 0x356   :  { %v1414_v22 = vpop.eup %1413  ;;  %1084 = vadd.xlane.f32.xlu1 %v1083_v7  ;;  %v1390_v7 = vld [vmem:[%s2231_s9] ss:$0 sm:$0xff]  ;;  %s1229_s9 = sshll.u32 %s1476_s8, 4  ;;  %s1230_s9 = int_to_ptr.vmem [resolvable:$true] %s1229_s9 }
 0x357   :  { %v1262_v1 = vadd.f32 -1.0, %v1414_v22 }
 0x359   :  { %v1069_v42 = vsel %vm1049_vm4, %v1042_v38, %v1262_v1 }
 0x35a   :  { %v1120_v57 = vmul.f32 %v1270_v56, %v1069_v42  ;;  %v1141_v31 = vmul.f32 %v1274_v53, %v1069_v42  ;;  %v1099_v12 = vmul.f32 %v1266_v41, %v1069_v42  ;;  %v1077_v55 = vmul.f32 %v1073_v33, %v1069_v42 }
 0x35c   :  { %v1128_v60 = vsel %vm1079_vm1, %v1120_v57, 0.0  ;;  %v1149_v61 = vsel %vm1079_vm1, %v1141_v31, 0.0  ;;  %v1107_v63 = vsel %vm1079_vm1, %v1099_v12, 0.0  ;;  %v1086_v0 = vsel %vm1079_vm1, %v1077_v55, 0.0 }
 0x35d   :  { %1129 = vadd.xlane.f32.xlu0 %v1128_v60  ;;  %1081 = vadd.xlane.f32.xlu2 %v1080_v26 }
 0x35e   :  { %1126 = vadd.xlane.f32.xlu1 %v1125_v37 }
 0x365   :  { %1150 = vadd.xlane.f32.xlu0 %v1149_v61  ;;  %1105 = vadd.xlane.f32.xlu2 %v1104_v62 }
 0x366   :  { %1108 = vadd.xlane.f32.xlu1 %v1107_v63 }
 0x36d   :  { %1144 = vadd.xlane.f32.xlu0 %v1143_v8  ;;  %1087 = vadd.xlane.f32.xlu2 %v1086_v0 }
 0x36e   :  { %1147 = vadd.xlane.f32.xlu1 %v1146_v18 }
 0x375   :  { %1123 = vadd.xlane.f32.xlu2 %v1122_v28 }
 0x3c0   :  { %v1112_v2 = vpop.xlane.xlu2 %1111  ;;  %v1133_v27 = vpop.xlane.xlu0 %1132 }
 0x3c1   :  { %v1091_v30 = vpop.xlane.xlu1 %1090 }
 0x3c2   :  { %v1159_v14 = vsel %vm1155_vm5, %v1091_v30, %v1112_v2 }
 0x3c3   :  { %v1164_v20 = vsel %vm1160_vm6, %v1159_v14, %v1133_v27 }
 0x3c8   :  { %v1154_v43 = vpop.xlane.xlu2 %1153  ;;  %v1103_v40 = vpop.xlane.xlu0 %1102 }
 0x3c9   :  { %v1169_v24 = vsel %vm1165_vm7, %v1164_v20, %v1154_v43  ;;  %v1085_v17 = vpop.xlane.xlu1 %1084 }
 0x3ca   :  { %1190 = vmatpush.msra.mxu1 %v1169_v24 }
 0x3d0   :  { %v1082_v38 = vpop.xlane.xlu2 %1081  ;;  %v1130_v5 = vpop.xlane.xlu0 %1129 }
 0x3d1   :  { %v1127_v29 = vpop.xlane.xlu1 %1126  ;;  %v1156_v50 = vsel %vm1155_vm5, %v1082_v38, %v1103_v40 }
 0x3d8   :  { %v1106_v35 = vpop.xlane.xlu2 %1105  ;;  %v1151_v46 = vpop.xlane.xlu0 %1150 }
 0x3d9   :  { %v1109_v19 = vpop.xlane.xlu1 %1108  ;;  %v1157_v16 = vsel %vm1155_vm5, %v1085_v17, %v1106_v35 }
 0x3da   :  { %v1162_v11 = vsel %vm1160_vm6, %v1157_v16, %v1127_v29 }
 0x3e0   :  { %v1088_v34 = vpop.xlane.xlu2 %1087  ;;  %v1145_v36 = vpop.xlane.xlu0 %1144 }
 0x3e1   :  { %v1158_v45 = vsel %vm1155_vm5, %v1088_v34, %v1109_v19  ;;  %v1148_v6 = vpop.xlane.xlu1 %1147 }
 0x3e2   :  { %v1163_v47 = vsel %vm1160_vm6, %v1158_v45, %v1130_v5  ;;  %v1167_v58 = vsel %vm1165_vm7, %v1162_v11, %v1148_v6 }
 0x3e3   :  { %v1168_v32 = vsel %vm1165_vm7, %v1163_v47, %v1151_v46 }
 0x3e4   :  { %1191 = vmatpush.msra.mxu1 %v1168_v32 }
 0x3e6   :  { %1192 = vmatpush.msra.mxu1 %v1167_v58 }
 0x3e8   :  { %v1124_v48 = vpop.xlane.xlu2 %1123 }
 0x3e9   :  { %v1161_v10 = vsel %vm1160_vm6, %v1156_v50, %v1124_v48 }
 0x3ea   :  { %v1166_v39 = vsel %vm1165_vm7, %v1161_v10, %v1145_v36 }
 0x3eb   :  { %1193 = vmatpush.msra.mxu1 %v1166_v39 }
 0x3ec   :  { %1276 = vmatmul.msk.f32.vlgmr.msra.gmra.mxu1 %vm1005_vm15, %v1170_v4 }
 0x469   :  { %v1195_v52 = vpop.f32.mrf.mxu1 }
 0x46a   :  { %v1196_v23 = vadd.f32 %v1390_v7, %v1195_v52 }
 0x46c   :  { %v1199_v22 = vsel %vm1198_vm8, %v1196_v23, -inf }
 0x46d   :  { %1200 = vmax.xlane.f32.xlu1 %v1199_v22 }
 0x4e0   :  { %v1201_v15 = vpop.xlane.xlu1 %1200 }
 0x4e1   :  { %v1202_v1 = vsub.f32 %v1196_v23, %v1201_v15 }
 0x4e3   :  { %v1203_v56 = vmul.f32 1.442695, %v1202_v1 }
 0x4e5   :  { %1415 = vpow2.f32 %v1203_v56 }
 0x4eb   :  { %v1416_v54 = vpop.eup %1415 }
 0x4ec   :  { %v1205_v42 = vsel %vm1198_vm8, %v1416_v54, 0.0 }
 0x4ed   :  { %1206 = vadd.xlane.f32.xlu2 %v1205_v42 }
 0x560   :  { %v1207_v44 = vpop.xlane.xlu2 %1206 }
 0x561   :  { %1417 = vrcp.f32 %v1207_v44  ;;  %v1219_v37 = vand.u32 2147483648, %v1207_v44  ;;  %v1217_v3 = vand.u32 2147483647, %v1207_v44  ;;  %vm1213_vm10 = vweird.f32 %v1207_v44 }
 0x563   :  { %v1220_v31 = vor.u32 1.1754944e-38, %v1219_v37  ;;  %vm1218_vm12 = vcmp.eq.f32.partialorder %v1217_v3, 8.507059e+37 }
 0x567   :  { %v1418_v57 = vpop.eup %1417 }
 0x568   :  { %v1209_v60 = vmul.f32 %v1418_v57, %v1207_v44  ;;  %vm1214_vm9 = vweird.f32 %v1418_v57 }
 0x569   :  { %vm1215_vm11 = vmor %vm1213_vm10, %vm1214_vm9 }
 0x56a   :  { %v1210_v26 = vsub.f32 1.0, %v1209_v60 }
 0x56c   :  { %v1211_v53 = vmul.f32 %v1418_v57, %v1210_v26 }
 0x56e   :  { %v1212_v41 = vadd.f32 %v1418_v57, %v1211_v53 }
 0x570   :  { %v1216_v25 = vsel %vm1215_vm11, %v1418_v57, %v1212_v41 }
 0x571   :  { %v1221_v12 = vsel %vm1218_vm12, %v1220_v31, %v1216_v25 }
 0x572   :  { %v1222_v61 = vmul.f32 %v1416_v54, %v1221_v12 }
 0x574   :  { %1223 = vst.msk [vmem:[#allocation2] sm:$0x3] %vm1198_vm8, %v1222_v61 }
 0x575   :  { %1234 = dma.vmem_to_hbm [thread:$0]  %s1230_s9, 32, %s1232_s30, [#allocation3]  }
 0x576   :  { %1443 = dma.done.wait [#allocation3], 32  }
 0x577   :  { %1444 = vsyncadd [#allocation3], 4294967264 }
 0x578   :  { %1239 = vsyncpa [#allocation3], 1 }

</bundles_post_ra>
